<compile_context>
chip_gen: v6e
topology: v6e:2x2x1
jax: 0.10.0
libtpu: 0.0.40
codegen_flags: <defaults>
</compile_context>

<pallas_src>
import jax
import jax.numpy as jnp
from jax.experimental import pallas as pl
from jax.experimental.pallas import tpu as pltpu

BN_EPS = 1e-5  # torch.nn.BatchNorm1d default eps


def smooth_conv_block_kernel(
    node_ref, edge_ref, oh_src_ref, oh_dst_ref, oh_dstT_ref, vec_ref,
    we1_ref, we2_ref, wsd_ref, wt1_ref, wt2_ref, wpd_ref, wpe_ref, wp_ref,
    out_ref,
):
    N, D = node_ref.shape
    H = we2_ref.shape[-1]
    L = vec_ref.shape[0]

    f32 = jnp.float32
    bf16 = jnp.bfloat16
    relu = lambda x: jnp.maximum(x, 0.0)

    h = node_ref[...]            # [N, D] f32 node state (residual carrier)
    edge_bf = edge_ref[...]      # [E, Ed] bf16 (pre-cast in wrapper)
    oh_src = oh_src_ref[...]     # [E, N] f32
    oh_dst = oh_dst_ref[...]     # [E, N] f32
    oh_dstT = oh_dstT_ref[...]   # [N, E] f32

    for l in range(L):           # L is small & static -> fully unrolled
        # ---- packed per-layer vectors: [8, 128] f32 ----
        v = vec_ref[l]
        bn_s  = v[0:1, :D]       # folded BN scale  = gamma * rsqrt(var+eps)
        bn_o  = v[1:2, :D]       # folded BN shift  = beta - mean * scale
        be1   = v[2:3, :]        # edge_affine hidden bias        [1, Hm]
        t_b   = v[3:4, :]        # be2 + bs + bd (folded)         [1, H]
        bt1   = v[4:5, :]        # theta_edge hidden bias         [1, H]
        bt2   = v[5:6, :D]       # theta_edge output bias         [1, D]
        b_pde = v[6:7, :]        # bpd + bpe (folded)             [1, H]
        bp    = v[7:8, :D]       # phi output bias                [1, D]

        # ---- BatchNorm1d (inference, pre-folded to scale/shift) ----
        h_norm = h * bn_s + bn_o                                   # [N, D] f32
        hn_bf = h_norm.astype(bf16)                                # hoisted cast

        # ---- exact f32 gather of src-node features (message path) ----
        src_emb = jnp.dot(oh_src, h_norm, preferred_element_type=f32)      # [E, D]

        # ---- src/dst affine: fused weights + project-then-gather ----
        hsd = jnp.dot(hn_bf, wsd_ref[l], preferred_element_type=f32)       # [N, 2H]
        src_code = jnp.dot(oh_src, hsd[:, :H], preferred_element_type=f32) # [E, H]
        dst_code = jnp.dot(oh_dst, hsd[:, H:], preferred_element_type=f32) # [E, H]

        # ---- edge_affine: Linear(Ed,Hm) -> ReLU -> Linear(Hm,H) ----
        edge_h = relu(jnp.dot(edge_bf, we1_ref[l],
                              preferred_element_type=f32) + be1)
        edge_code = jnp.dot(edge_h.astype(bf16), we2_ref[l],
                            preferred_element_type=f32)                    # [E, H]

        # ---- theta_edge: ReLU -> Linear(H,H) -> ReLU -> Linear(H,D) ----
        t = edge_code + src_code + dst_code + t_b
        te = relu(jnp.dot(relu(t).astype(bf16), wt1_ref[l],
                          preferred_element_type=f32) + bt1)
        e_emb = jnp.dot(te.astype(bf16), wt2_ref[l],
                        preferred_element_type=f32) + bt2                  # [E, D]

        # ---- message u_mul_e + scatter-add via pre-transposed one-hot ----
        msg = src_emb * e_emb                                              # [E, D]
        agg = jnp.dot(oh_dstT, msg, preferred_element_type=f32)            # [N, D]

        # ---- phi( phi_dst(h_norm) + phi_edge(agg) ) ----
        z = (jnp.dot(hn_bf, wpd_ref[l], preferred_element_type=f32)
             + jnp.dot(agg.astype(bf16), wpe_ref[l], preferred_element_type=f32)
             + b_pde)                                                      # [N, H]
        conv_out = jnp.dot(relu(z).astype(bf16), wp_ref[l],
                           preferred_element_type=f32) + bp                # [N, D]

        # ---- block-level residual ----
        h = conv_out + h

    # TODO(synk): if N grows, keep h in a [N,128]-padded scratch to avoid
    # lane-sparse masked stores; negligible at N=16.
    out_ref[...] = h


def smooth_conv_block_pallas(node, edge, src_idx, dst_idx, params):
    N, D = node.shape
    E, Ed = edge.shape
    L = params["we1"].shape[0]
    Hm = params["we1"].shape[-1]
    H = params["we2"].shape[-1]
    assert D <= 128 and H <= 128 and Hm <= 128, "vector packing assumes <=128 lanes"

    f32 = jnp.float32
    bf16 = jnp.bfloat16

    # One-hot gather / (pre-transposed) scatter matrices, built ONCE.
    node_ids = jnp.arange(N, dtype=src_idx.dtype)
    oh_src = (src_idx[:, None] == node_ids[None, :]).astype(f32)    # [E, N]
    oh_dst = (dst_idx[:, None] == node_ids[None, :]).astype(f32)    # [E, N]
    oh_dstT = (node_ids[:, None] == dst_idx[None, :]).astype(f32)   # [N, E]

    # Fold BatchNorm (inference) into scale/shift.
    bn_s = params["bn_g"] * jax.lax.rsqrt(params["bn_rv"] + BN_EPS)  # [L,1,D]
    bn_o = params["bn_b"] - params["bn_rm"] * bn_s                   # [L,1,D]

    # Pack all per-layer small vectors into one [L, 8, 128] array.
    VW = 128
    def padv(x):  # [L,1,w] -> [L,1,128]
        return jnp.pad(x, ((0, 0), (0, 0), (0, VW - x.shape[-1])))
    t_bias = params["be2"] + params["bs"] + params["bd"]             # [L,1,H]
    b_pde = params["bpd"] + params["bpe"]                            # [L,1,H]
    vec = jnp.concatenate(
        [padv(bn_s), padv(bn_o), padv(params["be1"]), padv(t_bias),
         padv(params["bt1"]), padv(params["bt2"]), padv(b_pde),
         padv(params["bp"])], axis=1)                                # [L,8,128] f32

    # Stacked bf16 weights (half the DMA bytes, 2x MXU rate, f32 accumulation).
    wsd = jnp.concatenate([params["ws"], params["wd"]], axis=-1)     # [L, D, 2H]
    we1 = params["we1"].astype(bf16)
    we2 = params["we2"].astype(bf16)
    wsd = wsd.astype(bf16)
    wt1 = params["wt1"].astype(bf16)
    wt2 = params["wt2"].astype(bf16)
    wpd = params["wpd"].astype(bf16)
    wpe = params["wpe"].astype(bf16)
    wp = params["wp"].astype(bf16)

    edge_bf = edge.astype(bf16)   # pre-cast once (only ever feeds bf16 matmuls)

    inputs = [node, edge_bf, oh_src, oh_dst, oh_dstT, vec,
              we1, we2, wsd, wt1, wt2, wpd, wpe, wp]

    vmem_spec = lambda: pl.BlockSpec(memory_space=pltpu.MemorySpace.VMEM)

    return pl.pallas_call(
        smooth_conv_block_kernel,
        in_specs=[vmem_spec() for _ in inputs],
        out_specs=vmem_spec(),
        out_shape=jax.ShapeDtypeStruct((N, D), jnp.float32),
        compiler_params=pltpu.CompilerParams(
            vmem_limit_bytes=32 * 1024 * 1024),
    )(*inputs)


# ------------------------- pure-JAX reference (f32, exact) -------------------------
def smooth_conv_block_ref(node, edge, src_idx, dst_idx, p):
    h = node
    L = p["we1"].shape[0]
    for l in range(L):
        hn = (h - p["bn_rm"][l]) * jax.lax.rsqrt(p["bn_rv"][l] + BN_EPS)
        hn = hn * p["bn_g"][l] + p["bn_b"][l]
        edge_code = (jnp.maximum(edge @ p["we1"][l] + p["be1"][l], 0.0)
                     @ p["we2"][l] + p["be2"][l])
        src_emb = hn[src_idx]
        dst_emb = hn[dst_idx]
        src_code = src_emb @ p["ws"][l] + p["bs"][l]
        dst_code = dst_emb @ p["wd"][l] + p["bd"][l]
        t = edge_code + src_code + dst_code
        te = jnp.maximum(jnp.maximum(t, 0.0) @ p["wt1"][l] + p["bt1"][l], 0.0)
        e_emb = te @ p["wt2"][l] + p["bt2"][l]
        msg = src_emb * e_emb
        agg = jax.ops.segment_sum(msg, dst_idx, num_segments=h.shape[0])
        z = hn @ p["wpd"][l] + p["bpd"][l] + agg @ p["wpe"][l] + p["bpe"][l]
        conv_out = jnp.maximum(z, 0.0) @ p["wp"][l] + p["bp"][l]
        h = conv_out + h
    return h


# ------------------------- deterministic parameter init -------------------------
def make_block_params(key, num_layers, node_dim, edge_dim, hidden_dim, mlp_hidden):
    L, D, Ed, H, Hm = num_layers, node_dim, edge_dim, hidden_dim, mlp_hidden
    keys = list(jax.random.split(key, 32))
    kit = iter(keys)

    def w(shape, fan_in):
        return jax.random.normal(next(kit), (L,) + shape, jnp.float32) / jnp.sqrt(fan_in)

    def b(shape):
        return 0.05 * jax.random.normal(next(kit), (L,) + shape, jnp.float32)

    return {
        # BatchNorm1d (inference): affine + running stats
        "bn_g": 1.0 + 0.1 * jax.random.normal(next(kit), (L, 1, D), jnp.float32),
        "bn_b": 0.1 * jax.random.normal(next(kit), (L, 1, D), jnp.float32),
        "bn_rm": 0.1 * jax.random.normal(next(kit), (L, 1, D), jnp.float32),
        "bn_rv": 1.0 + 0.5 * jax.random.uniform(next(kit), (L, 1, D), jnp.float32),
        # edge_affine: Linear(Ed,Hm) -> ReLU -> Linear(Hm,H)
        "we1": w((Ed, Hm), Ed), "be1": b((1, Hm)),
        "we2": w((Hm, H), Hm), "be2": b((1, H)),
        # src_affine / dst_affine: Linear(D,H)
        "ws": w((D, H), D), "bs": b((1, H)),
        "wd": w((D, H), D), "bd": b((1, H)),
        # theta_edge: ReLU -> Linear(H,H) -> ReLU -> Linear(H,D)
        "wt1": w((H, H), H), "bt1": b((1, H)),
        "wt2": w((H, D), H), "bt2": b((1, D)),
        # phi_dst / phi_edge: Linear(D,H);  phi: ReLU -> Linear(H,D)
        "wpd": w((D, H), D), "bpd": b((1, H)),
        "wpe": w((D, H), D), "bpe": b((1, H)),
        "wp": w((H, D), H), "bp": b((1, D)),
    }


if __name__ == "__main__":
    L = 3            # conv_layer (module default)
    N, E = 16, 48    # nodes, edges
    D = 32           # in_node_feats == out_node_feats (residual requires equality)
    Ed = 64          # edge_emb_dim (module default)
    H = 128          # hidden_dim (module default) -> lane-dense intermediates
    Hm = 128         # MLP default internal hidden (edge_affine)

    root = jax.random.PRNGKey(0)
    k_node, k_edge, k_idx, k_par = jax.random.split(root, 4)

    node = jax.random.normal(k_node, (N, D), jnp.float32)
    edge = jax.random.normal(k_edge, (E, Ed), jnp.float32)
    edge_index = jax.random.randint(k_idx, (2, E), 0, N, dtype=jnp.int32)
    src_idx, dst_idx = edge_index[0], edge_index[1]

    params = make_block_params(k_par, L, D, Ed, H, Hm)

    fwd = jax.jit(smooth_conv_block_pallas)
    out = jax.block_until_ready(fwd(node, edge, src_idx, dst_idx, params))

    ref = jax.block_until_ready(
        smooth_conv_block_ref(node, edge, src_idx, dst_idx, params))

    assert out.shape == (N, D) and out.dtype == jnp.float32
    # bf16 MLP matmuls (f32 accumulation) -> scale-relative tolerance
    rel_err = float(jnp.max(jnp.abs(out - ref)) / (jnp.max(jnp.abs(ref)) + 1e-6))
    assert rel_err < 2e-2, f"mismatch vs reference: rel_err={rel_err:.3e}"

    print("KERNEL_OK")
</pallas_src>

<mosaic_0001>
module attributes {stable_mosaic.version = 11 : i64} {
  func.func @smooth_conv_block_kernel(%arg0: memref<16x32xf32, #tpu.memory_space<vmem>>, %arg1: memref<48x64xbf16, #tpu.memory_space<vmem>>, %arg2: memref<48x16xf32, #tpu.memory_space<vmem>>, %arg3: memref<48x16xf32, #tpu.memory_space<vmem>>, %arg4: memref<16x48xf32, #tpu.memory_space<vmem>>, %arg5: memref<3x8x128xf32, #tpu.memory_space<vmem>>, %arg6: memref<3x64x128xbf16, #tpu.memory_space<vmem>>, %arg7: memref<3x128x128xbf16, #tpu.memory_space<vmem>>, %arg8: memref<3x32x256xbf16, #tpu.memory_space<vmem>>, %arg9: memref<3x128x128xbf16, #tpu.memory_space<vmem>>, %arg10: memref<3x128x32xbf16, #tpu.memory_space<vmem>>, %arg11: memref<3x32x128xbf16, #tpu.memory_space<vmem>>, %arg12: memref<3x32x128xbf16, #tpu.memory_space<vmem>>, %arg13: memref<3x128x32xbf16, #tpu.memory_space<vmem>>, %arg14: memref<16x32xf32, #tpu.memory_space<vmem>>) attributes {dimension_semantics = [], scalar_prefetch = 0 : i64, scratch_operands = 0 : i64, tpu.core_type = #tpu.core_type<tc>} {
    %c0 = arith.constant 0 : index
    %c0_0 = arith.constant 0 : index
    %0 = vector.load %arg0[%c0, %c0_0] : memref<16x32xf32, #tpu.memory_space<vmem>>, vector<16x32xf32>
    %c0_1 = arith.constant 0 : index
    %c0_2 = arith.constant 0 : index
    %1 = vector.load %arg1[%c0_1, %c0_2] : memref<48x64xbf16, #tpu.memory_space<vmem>>, vector<48x64xbf16>
    %c0_3 = arith.constant 0 : index
    %c0_4 = arith.constant 0 : index
    %2 = vector.load %arg2[%c0_3, %c0_4] : memref<48x16xf32, #tpu.memory_space<vmem>>, vector<48x16xf32>
    %c0_5 = arith.constant 0 : index
    %c0_6 = arith.constant 0 : index
    %3 = vector.load %arg3[%c0_5, %c0_6] : memref<48x16xf32, #tpu.memory_space<vmem>>, vector<48x16xf32>
    %c0_7 = arith.constant 0 : index
    %c0_8 = arith.constant 0 : index
    %4 = vector.load %arg4[%c0_7, %c0_8] : memref<16x48xf32, #tpu.memory_space<vmem>>, vector<16x48xf32>
    %c0_9 = arith.constant 0 : index
    %c0_10 = arith.constant 0 : index
    %c0_11 = arith.constant 0 : index
    %5 = vector.load %arg5[%c0_9, %c0_10, %c0_11] : memref<3x8x128xf32, #tpu.memory_space<vmem>>, vector<1x8x128xf32>
    %6 = vector.shape_cast %5 : vector<1x8x128xf32> to vector<8x128xf32>
    %7 = vector.extract_strided_slice %6 {offsets = [0, 0], sizes = [1, 32], strides = [1, 1]} : vector<8x128xf32> to vector<1x32xf32>
    %8 = vector.extract_strided_slice %6 {offsets = [1, 0], sizes = [1, 32], strides = [1, 1]} : vector<8x128xf32> to vector<1x32xf32>
    %9 = vector.extract_strided_slice %6 {offsets = [2, 0], sizes = [1, 128], strides = [1, 1]} : vector<8x128xf32> to vector<1x128xf32>
    %10 = vector.extract_strided_slice %6 {offsets = [3, 0], sizes = [1, 128], strides = [1, 1]} : vector<8x128xf32> to vector<1x128xf32>
    %11 = vector.extract_strided_slice %6 {offsets = [4, 0], sizes = [1, 128], strides = [1, 1]} : vector<8x128xf32> to vector<1x128xf32>
    %12 = vector.extract_strided_slice %6 {offsets = [5, 0], sizes = [1, 32], strides = [1, 1]} : vector<8x128xf32> to vector<1x32xf32>
    %13 = vector.extract_strided_slice %6 {offsets = [6, 0], sizes = [1, 128], strides = [1, 1]} : vector<8x128xf32> to vector<1x128xf32>
    %14 = vector.extract_strided_slice %6 {offsets = [7, 0], sizes = [1, 32], strides = [1, 1]} : vector<8x128xf32> to vector<1x32xf32>
    %15 = vector.broadcast %7 : vector<1x32xf32> to vector<16x32xf32>
    %16 = arith.mulf %0, %15 : vector<16x32xf32>
    %17 = vector.broadcast %8 : vector<1x32xf32> to vector<16x32xf32>
    %18 = arith.addf %16, %17 : vector<16x32xf32>
    %19 = arith.truncf %18 : vector<16x32xf32> to vector<16x32xbf16>
    %cst = arith.constant dense<0.000000e+00> : vector<48x32xf32>
    %20 = tpu.matmul %2, %18, %cst {dimension_numbers = #tpu.dot_dimension_numbers<[1], [0], [0], [1], [0, 0, 1, 1], [], []>} : vector<48x16xf32>, vector<16x32xf32>, vector<48x32xf32> -> vector<48x32xf32>
    %c0_12 = arith.constant 0 : index
    %c0_13 = arith.constant 0 : index
    %c0_14 = arith.constant 0 : index
    %21 = vector.load %arg8[%c0_12, %c0_13, %c0_14] : memref<3x32x256xbf16, #tpu.memory_space<vmem>>, vector<1x32x256xbf16>
    %22 = vector.shape_cast %21 : vector<1x32x256xbf16> to vector<32x256xbf16>
    %cst_15 = arith.constant dense<0.000000e+00> : vector<16x256xf32>
    %23 = tpu.matmul %19, %22, %cst_15 {dimension_numbers = #tpu.dot_dimension_numbers<[1], [0], [0], [1], [0, 0, 1, 1], [], []>} : vector<16x32xbf16>, vector<32x256xbf16>, vector<16x256xf32> -> vector<16x256xf32>
    %24 = vector.extract_strided_slice %23 {offsets = [0, 0], sizes = [16, 128], strides = [1, 1]} : vector<16x256xf32> to vector<16x128xf32>
    %cst_16 = arith.constant dense<0.000000e+00> : vector<48x128xf32>
    %25 = tpu.matmul %2, %24, %cst_16 {dimension_numbers = #tpu.dot_dimension_numbers<[1], [0], [0], [1], [0, 0, 1, 1], [], []>} : vector<48x16xf32>, vector<16x128xf32>, vector<48x128xf32> -> vector<48x128xf32>
    %26 = vector.extract_strided_slice %23 {offsets = [0, 128], sizes = [16, 128], strides = [1, 1]} : vector<16x256xf32> to vector<16x128xf32>
    %cst_17 = arith.constant dense<0.000000e+00> : vector<48x128xf32>
    %27 = tpu.matmul %3, %26, %cst_17 {dimension_numbers = #tpu.dot_dimension_numbers<[1], [0], [0], [1], [0, 0, 1, 1], [], []>} : vector<48x16xf32>, vector<16x128xf32>, vector<48x128xf32> -> vector<48x128xf32>
    %c0_18 = arith.constant 0 : index
    %c0_19 = arith.constant 0 : index
    %c0_20 = arith.constant 0 : index
    %28 = vector.load %arg6[%c0_18, %c0_19, %c0_20] : memref<3x64x128xbf16, #tpu.memory_space<vmem>>, vector<1x64x128xbf16>
    %29 = vector.shape_cast %28 : vector<1x64x128xbf16> to vector<64x128xbf16>
    %cst_21 = arith.constant dense<0.000000e+00> : vector<48x128xf32>
    %30 = tpu.matmul %1, %29, %cst_21 {dimension_numbers = #tpu.dot_dimension_numbers<[1], [0], [0], [1], [0, 0, 1, 1], [], []>} : vector<48x64xbf16>, vector<64x128xbf16>, vector<48x128xf32> -> vector<48x128xf32>
    %31 = vector.broadcast %9 : vector<1x128xf32> to vector<48x128xf32>
    %32 = arith.addf %30, %31 : vector<48x128xf32>
    %cst_22 = arith.constant 0.000000e+00 : f32
    %33 = vector.broadcast %cst_22 : f32 to vector<48x128xf32>
    %34 = arith.maximumf %32, %33 : vector<48x128xf32>
    %35 = arith.truncf %34 : vector<48x128xf32> to vector<48x128xbf16>
    %c0_23 = arith.constant 0 : index
    %c0_24 = arith.constant 0 : index
    %c0_25 = arith.constant 0 : index
    %36 = vector.load %arg7[%c0_23, %c0_24, %c0_25] : memref<3x128x128xbf16, #tpu.memory_space<vmem>>, vector<1x128x128xbf16>
    %37 = vector.shape_cast %36 : vector<1x128x128xbf16> to vector<128x128xbf16>
    %cst_26 = arith.constant dense<0.000000e+00> : vector<48x128xf32>
    %38 = tpu.matmul %35, %37, %cst_26 {dimension_numbers = #tpu.dot_dimension_numbers<[1], [0], [0], [1], [0, 0, 1, 1], [], []>} : vector<48x128xbf16>, vector<128x128xbf16>, vector<48x128xf32> -> vector<48x128xf32>
    %39 = arith.addf %38, %25 : vector<48x128xf32>
    %40 = arith.addf %39, %27 : vector<48x128xf32>
    %41 = vector.broadcast %10 : vector<1x128xf32> to vector<48x128xf32>
    %42 = arith.addf %40, %41 : vector<48x128xf32>
    %cst_27 = arith.constant 0.000000e+00 : f32
    %43 = vector.broadcast %cst_27 : f32 to vector<48x128xf32>
    %44 = arith.maximumf %42, %43 : vector<48x128xf32>
    %45 = arith.truncf %44 : vector<48x128xf32> to vector<48x128xbf16>
    %c0_28 = arith.constant 0 : index
    %c0_29 = arith.constant 0 : index
    %c0_30 = arith.constant 0 : index
    %46 = vector.load %arg9[%c0_28, %c0_29, %c0_30] : memref<3x128x128xbf16, #tpu.memory_space<vmem>>, vector<1x128x128xbf16>
    %47 = vector.shape_cast %46 : vector<1x128x128xbf16> to vector<128x128xbf16>
    %cst_31 = arith.constant dense<0.000000e+00> : vector<48x128xf32>
    %48 = tpu.matmul %45, %47, %cst_31 {dimension_numbers = #tpu.dot_dimension_numbers<[1], [0], [0], [1], [0, 0, 1, 1], [], []>} : vector<48x128xbf16>, vector<128x128xbf16>, vector<48x128xf32> -> vector<48x128xf32>
    %49 = vector.broadcast %11 : vector<1x128xf32> to vector<48x128xf32>
    %50 = arith.addf %48, %49 : vector<48x128xf32>
    %cst_32 = arith.constant 0.000000e+00 : f32
    %51 = vector.broadcast %cst_32 : f32 to vector<48x128xf32>
    %52 = arith.maximumf %50, %51 : vector<48x128xf32>
    %53 = arith.truncf %52 : vector<48x128xf32> to vector<48x128xbf16>
    %c0_33 = arith.constant 0 : index
    %c0_34 = arith.constant 0 : index
    %c0_35 = arith.constant 0 : index
    %54 = vector.load %arg10[%c0_33, %c0_34, %c0_35] : memref<3x128x32xbf16, #tpu.memory_space<vmem>>, vector<1x128x32xbf16>
    %55 = vector.shape_cast %54 : vector<1x128x32xbf16> to vector<128x32xbf16>
    %cst_36 = arith.constant dense<0.000000e+00> : vector<48x32xf32>
    %56 = tpu.matmul %53, %55, %cst_36 {dimension_numbers = #tpu.dot_dimension_numbers<[1], [0], [0], [1], [0, 0, 1, 1], [], []>} : vector<48x128xbf16>, vector<128x32xbf16>, vector<48x32xf32> -> vector<48x32xf32>
    %57 = vector.broadcast %12 : vector<1x32xf32> to vector<48x32xf32>
    %58 = arith.addf %56, %57 : vector<48x32xf32>
    %59 = arith.mulf %20, %58 : vector<48x32xf32>
    %cst_37 = arith.constant dense<0.000000e+00> : vector<16x32xf32>
    %60 = tpu.matmul %4, %59, %cst_37 {dimension_numbers = #tpu.dot_dimension_numbers<[1], [0], [0], [1], [0, 0, 1, 1], [], []>} : vector<16x48xf32>, vector<48x32xf32>, vector<16x32xf32> -> vector<16x32xf32>
    %c0_38 = arith.constant 0 : index
    %c0_39 = arith.constant 0 : index
    %c0_40 = arith.constant 0 : index
    %61 = vector.load %arg11[%c0_38, %c0_39, %c0_40] : memref<3x32x128xbf16, #tpu.memory_space<vmem>>, vector<1x32x128xbf16>
    %62 = vector.shape_cast %61 : vector<1x32x128xbf16> to vector<32x128xbf16>
    %cst_41 = arith.constant dense<0.000000e+00> : vector<16x128xf32>
    %63 = tpu.matmul %19, %62, %cst_41 {dimension_numbers = #tpu.dot_dimension_numbers<[1], [0], [0], [1], [0, 0, 1, 1], [], []>} : vector<16x32xbf16>, vector<32x128xbf16>, vector<16x128xf32> -> vector<16x128xf32>
    %64 = arith.truncf %60 : vector<16x32xf32> to vector<16x32xbf16>
    %c0_42 = arith.constant 0 : index
    %c0_43 = arith.constant 0 : index
    %c0_44 = arith.constant 0 : index
    %65 = vector.load %arg12[%c0_42, %c0_43, %c0_44] : memref<3x32x128xbf16, #tpu.memory_space<vmem>>, vector<1x32x128xbf16>
    %66 = vector.shape_cast %65 : vector<1x32x128xbf16> to vector<32x128xbf16>
    %cst_45 = arith.constant dense<0.000000e+00> : vector<16x128xf32>
    %67 = tpu.matmul %64, %66, %cst_45 {dimension_numbers = #tpu.dot_dimension_numbers<[1], [0], [0], [1], [0, 0, 1, 1], [], []>} : vector<16x32xbf16>, vector<32x128xbf16>, vector<16x128xf32> -> vector<16x128xf32>
    %68 = arith.addf %63, %67 : vector<16x128xf32>
    %69 = vector.broadcast %13 : vector<1x128xf32> to vector<16x128xf32>
    %70 = arith.addf %68, %69 : vector<16x128xf32>
    %cst_46 = arith.constant 0.000000e+00 : f32
    %71 = vector.broadcast %cst_46 : f32 to vector<16x128xf32>
    %72 = arith.maximumf %70, %71 : vector<16x128xf32>
    %73 = arith.truncf %72 : vector<16x128xf32> to vector<16x128xbf16>
    %c0_47 = arith.constant 0 : index
    %c0_48 = arith.constant 0 : index
    %c0_49 = arith.constant 0 : index
    %74 = vector.load %arg13[%c0_47, %c0_48, %c0_49] : memref<3x128x32xbf16, #tpu.memory_space<vmem>>, vector<1x128x32xbf16>
    %75 = vector.shape_cast %74 : vector<1x128x32xbf16> to vector<128x32xbf16>
    %cst_50 = arith.constant dense<0.000000e+00> : vector<16x32xf32>
    %76 = tpu.matmul %73, %75, %cst_50 {dimension_numbers = #tpu.dot_dimension_numbers<[1], [0], [0], [1], [0, 0, 1, 1], [], []>} : vector<16x128xbf16>, vector<128x32xbf16>, vector<16x32xf32> -> vector<16x32xf32>
    %77 = vector.broadcast %14 : vector<1x32xf32> to vector<16x32xf32>
    %78 = arith.addf %76, %77 : vector<16x32xf32>
    %79 = arith.addf %78, %0 : vector<16x32xf32>
    %c1 = arith.constant 1 : index
    %c0_51 = arith.constant 0 : index
    %c0_52 = arith.constant 0 : index
    %80 = vector.load %arg5[%c1, %c0_51, %c0_52] : memref<3x8x128xf32, #tpu.memory_space<vmem>>, vector<1x8x128xf32>
    %81 = vector.shape_cast %80 : vector<1x8x128xf32> to vector<8x128xf32>
    %82 = vector.extract_strided_slice %81 {offsets = [0, 0], sizes = [1, 32], strides = [1, 1]} : vector<8x128xf32> to vector<1x32xf32>
    %83 = vector.extract_strided_slice %81 {offsets = [1, 0], sizes = [1, 32], strides = [1, 1]} : vector<8x128xf32> to vector<1x32xf32>
    %84 = vector.extract_strided_slice %81 {offsets = [2, 0], sizes = [1, 128], strides = [1, 1]} : vector<8x128xf32> to vector<1x128xf32>
    %85 = vector.extract_strided_slice %81 {offsets = [3, 0], sizes = [1, 128], strides = [1, 1]} : vector<8x128xf32> to vector<1x128xf32>
    %86 = vector.extract_strided_slice %81 {offsets = [4, 0], sizes = [1, 128], strides = [1, 1]} : vector<8x128xf32> to vector<1x128xf32>
    %87 = vector.extract_strided_slice %81 {offsets = [5, 0], sizes = [1, 32], strides = [1, 1]} : vector<8x128xf32> to vector<1x32xf32>
    %88 = vector.extract_strided_slice %81 {offsets = [6, 0], sizes = [1, 128], strides = [1, 1]} : vector<8x128xf32> to vector<1x128xf32>
    %89 = vector.extract_strided_slice %81 {offsets = [7, 0], sizes = [1, 32], strides = [1, 1]} : vector<8x128xf32> to vector<1x32xf32>
    %90 = vector.broadcast %82 : vector<1x32xf32> to vector<16x32xf32>
    %91 = arith.mulf %79, %90 : vector<16x32xf32>
    %92 = vector.broadcast %83 : vector<1x32xf32> to vector<16x32xf32>
    %93 = arith.addf %91, %92 : vector<16x32xf32>
    %94 = arith.truncf %93 : vector<16x32xf32> to vector<16x32xbf16>
    %cst_53 = arith.constant dense<0.000000e+00> : vector<48x32xf32>
    %95 = tpu.matmul %2, %93, %cst_53 {dimension_numbers = #tpu.dot_dimension_numbers<[1], [0], [0], [1], [0, 0, 1, 1], [], []>} : vector<48x16xf32>, vector<16x32xf32>, vector<48x32xf32> -> vector<48x32xf32>
    %c1_54 = arith.constant 1 : index
    %c0_55 = arith.constant 0 : index
    %c0_56 = arith.constant 0 : index
    %96 = vector.load %arg8[%c1_54, %c0_55, %c0_56] : memref<3x32x256xbf16, #tpu.memory_space<vmem>>, vector<1x32x256xbf16>
    %97 = vector.shape_cast %96 : vector<1x32x256xbf16> to vector<32x256xbf16>
    %cst_57 = arith.constant dense<0.000000e+00> : vector<16x256xf32>
    %98 = tpu.matmul %94, %97, %cst_57 {dimension_numbers = #tpu.dot_dimension_numbers<[1], [0], [0], [1], [0, 0, 1, 1], [], []>} : vector<16x32xbf16>, vector<32x256xbf16>, vector<16x256xf32> -> vector<16x256xf32>
    %99 = vector.extract_strided_slice %98 {offsets = [0, 0], sizes = [16, 128], strides = [1, 1]} : vector<16x256xf32> to vector<16x128xf32>
    %cst_58 = arith.constant dense<0.000000e+00> : vector<48x128xf32>
    %100 = tpu.matmul %2, %99, %cst_58 {dimension_numbers = #tpu.dot_dimension_numbers<[1], [0], [0], [1], [0, 0, 1, 1], [], []>} : vector<48x16xf32>, vector<16x128xf32>, vector<48x128xf32> -> vector<48x128xf32>
    %101 = vector.extract_strided_slice %98 {offsets = [0, 128], sizes = [16, 128], strides = [1, 1]} : vector<16x256xf32> to vector<16x128xf32>
    %cst_59 = arith.constant dense<0.000000e+00> : vector<48x128xf32>
    %102 = tpu.matmul %3, %101, %cst_59 {dimension_numbers = #tpu.dot_dimension_numbers<[1], [0], [0], [1], [0, 0, 1, 1], [], []>} : vector<48x16xf32>, vector<16x128xf32>, vector<48x128xf32> -> vector<48x128xf32>
    %c1_60 = arith.constant 1 : index
    %c0_61 = arith.constant 0 : index
    %c0_62 = arith.constant 0 : index
    %103 = vector.load %arg6[%c1_60, %c0_61, %c0_62] : memref<3x64x128xbf16, #tpu.memory_space<vmem>>, vector<1x64x128xbf16>
    %104 = vector.shape_cast %103 : vector<1x64x128xbf16> to vector<64x128xbf16>
    %cst_63 = arith.constant dense<0.000000e+00> : vector<48x128xf32>
    %105 = tpu.matmul %1, %104, %cst_63 {dimension_numbers = #tpu.dot_dimension_numbers<[1], [0], [0], [1], [0, 0, 1, 1], [], []>} : vector<48x64xbf16>, vector<64x128xbf16>, vector<48x128xf32> -> vector<48x128xf32>
    %106 = vector.broadcast %84 : vector<1x128xf32> to vector<48x128xf32>
    %107 = arith.addf %105, %106 : vector<48x128xf32>
    %cst_64 = arith.constant 0.000000e+00 : f32
    %108 = vector.broadcast %cst_64 : f32 to vector<48x128xf32>
    %109 = arith.maximumf %107, %108 : vector<48x128xf32>
    %110 = arith.truncf %109 : vector<48x128xf32> to vector<48x128xbf16>
    %c1_65 = arith.constant 1 : index
    %c0_66 = arith.constant 0 : index
    %c0_67 = arith.constant 0 : index
    %111 = vector.load %arg7[%c1_65, %c0_66, %c0_67] : memref<3x128x128xbf16, #tpu.memory_space<vmem>>, vector<1x128x128xbf16>
    %112 = vector.shape_cast %111 : vector<1x128x128xbf16> to vector<128x128xbf16>
    %cst_68 = arith.constant dense<0.000000e+00> : vector<48x128xf32>
    %113 = tpu.matmul %110, %112, %cst_68 {dimension_numbers = #tpu.dot_dimension_numbers<[1], [0], [0], [1], [0, 0, 1, 1], [], []>} : vector<48x128xbf16>, vector<128x128xbf16>, vector<48x128xf32> -> vector<48x128xf32>
    %114 = arith.addf %113, %100 : vector<48x128xf32>
    %115 = arith.addf %114, %102 : vector<48x128xf32>
    %116 = vector.broadcast %85 : vector<1x128xf32> to vector<48x128xf32>
    %117 = arith.addf %115, %116 : vector<48x128xf32>
    %cst_69 = arith.constant 0.000000e+00 : f32
    %118 = vector.broadcast %cst_69 : f32 to vector<48x128xf32>
    %119 = arith.maximumf %117, %118 : vector<48x128xf32>
    %120 = arith.truncf %119 : vector<48x128xf32> to vector<48x128xbf16>
    %c1_70 = arith.constant 1 : index
    %c0_71 = arith.constant 0 : index
    %c0_72 = arith.constant 0 : index
    %121 = vector.load %arg9[%c1_70, %c0_71, %c0_72] : memref<3x128x128xbf16, #tpu.memory_space<vmem>>, vector<1x128x128xbf16>
    %122 = vector.shape_cast %121 : vector<1x128x128xbf16> to vector<128x128xbf16>
    %cst_73 = arith.constant dense<0.000000e+00> : vector<48x128xf32>
    %123 = tpu.matmul %120, %122, %cst_73 {dimension_numbers = #tpu.dot_dimension_numbers<[1], [0], [0], [1], [0, 0, 1, 1], [], []>} : vector<48x128xbf16>, vector<128x128xbf16>, vector<48x128xf32> -> vector<48x128xf32>
    %124 = vector.broadcast %86 : vector<1x128xf32> to vector<48x128xf32>
    %125 = arith.addf %123, %124 : vector<48x128xf32>
    %cst_74 = arith.constant 0.000000e+00 : f32
    %126 = vector.broadcast %cst_74 : f32 to vector<48x128xf32>
    %127 = arith.maximumf %125, %126 : vector<48x128xf32>
    %128 = arith.truncf %127 : vector<48x128xf32> to vector<48x128xbf16>
    %c1_75 = arith.constant 1 : index
    %c0_76 = arith.constant 0 : index
    %c0_77 = arith.constant 0 : index
    %129 = vector.load %arg10[%c1_75, %c0_76, %c0_77] : memref<3x128x32xbf16, #tpu.memory_space<vmem>>, vector<1x128x32xbf16>
    %130 = vector.shape_cast %129 : vector<1x128x32xbf16> to vector<128x32xbf16>
    %cst_78 = arith.constant dense<0.000000e+00> : vector<48x32xf32>
    %131 = tpu.matmul %128, %130, %cst_78 {dimension_numbers = #tpu.dot_dimension_numbers<[1], [0], [0], [1], [0, 0, 1, 1], [], []>} : vector<48x128xbf16>, vector<128x32xbf16>, vector<48x32xf32> -> vector<48x32xf32>
    %132 = vector.broadcast %87 : vector<1x32xf32> to vector<48x32xf32>
    %133 = arith.addf %131, %132 : vector<48x32xf32>
    %134 = arith.mulf %95, %133 : vector<48x32xf32>
    %cst_79 = arith.constant dense<0.000000e+00> : vector<16x32xf32>
    %135 = tpu.matmul %4, %134, %cst_79 {dimension_numbers = #tpu.dot_dimension_numbers<[1], [0], [0], [1], [0, 0, 1, 1], [], []>} : vector<16x48xf32>, vector<48x32xf32>, vector<16x32xf32> -> vector<16x32xf32>
    %c1_80 = arith.constant 1 : index
    %c0_81 = arith.constant 0 : index
    %c0_82 = arith.constant 0 : index
    %136 = vector.load %arg11[%c1_80, %c0_81, %c0_82] : memref<3x32x128xbf16, #tpu.memory_space<vmem>>, vector<1x32x128xbf16>
    %137 = vector.shape_cast %136 : vector<1x32x128xbf16> to vector<32x128xbf16>
    %cst_83 = arith.constant dense<0.000000e+00> : vector<16x128xf32>
    %138 = tpu.matmul %94, %137, %cst_83 {dimension_numbers = #tpu.dot_dimension_numbers<[1], [0], [0], [1], [0, 0, 1, 1], [], []>} : vector<16x32xbf16>, vector<32x128xbf16>, vector<16x128xf32> -> vector<16x128xf32>
    %139 = arith.truncf %135 : vector<16x32xf32> to vector<16x32xbf16>
    %c1_84 = arith.constant 1 : index
    %c0_85 = arith.constant 0 : index
    %c0_86 = arith.constant 0 : index
    %140 = vector.load %arg12[%c1_84, %c0_85, %c0_86] : memref<3x32x128xbf16, #tpu.memory_space<vmem>>, vector<1x32x128xbf16>
    %141 = vector.shape_cast %140 : vector<1x32x128xbf16> to vector<32x128xbf16>
    %cst_87 = arith.constant dense<0.000000e+00> : vector<16x128xf32>
    %142 = tpu.matmul %139, %141, %cst_87 {dimension_numbers = #tpu.dot_dimension_numbers<[1], [0], [0], [1], [0, 0, 1, 1], [], []>} : vector<16x32xbf16>, vector<32x128xbf16>, vector<16x128xf32> -> vector<16x128xf32>
    %143 = arith.addf %138, %142 : vector<16x128xf32>
    %144 = vector.broadcast %88 : vector<1x128xf32> to vector<16x128xf32>
    %145 = arith.addf %143, %144 : vector<16x128xf32>
    %cst_88 = arith.constant 0.000000e+00 : f32
    %146 = vector.broadcast %cst_88 : f32 to vector<16x128xf32>
    %147 = arith.maximumf %145, %146 : vector<16x128xf32>
    %148 = arith.truncf %147 : vector<16x128xf32> to vector<16x128xbf16>
    %c1_89 = arith.constant 1 : index
    %c0_90 = arith.constant 0 : index
    %c0_91 = arith.constant 0 : index
    %149 = vector.load %arg13[%c1_89, %c0_90, %c0_91] : memref<3x128x32xbf16, #tpu.memory_space<vmem>>, vector<1x128x32xbf16>
    %150 = vector.shape_cast %149 : vector<1x128x32xbf16> to vector<128x32xbf16>
    %cst_92 = arith.constant dense<0.000000e+00> : vector<16x32xf32>
    %151 = tpu.matmul %148, %150, %cst_92 {dimension_numbers = #tpu.dot_dimension_numbers<[1], [0], [0], [1], [0, 0, 1, 1], [], []>} : vector<16x128xbf16>, vector<128x32xbf16>, vector<16x32xf32> -> vector<16x32xf32>
    %152 = vector.broadcast %89 : vector<1x32xf32> to vector<16x32xf32>
    %153 = arith.addf %151, %152 : vector<16x32xf32>
    %154 = arith.addf %153, %79 : vector<16x32xf32>
    %c2 = arith.constant 2 : index
    %c0_93 = arith.constant 0 : index
    %c0_94 = arith.constant 0 : index
    %155 = vector.load %arg5[%c2, %c0_93, %c0_94] : memref<3x8x128xf32, #tpu.memory_space<vmem>>, vector<1x8x128xf32>
    %156 = vector.shape_cast %155 : vector<1x8x128xf32> to vector<8x128xf32>
    %157 = vector.extract_strided_slice %156 {offsets = [0, 0], sizes = [1, 32], strides = [1, 1]} : vector<8x128xf32> to vector<1x32xf32>
    %158 = vector.extract_strided_slice %156 {offsets = [1, 0], sizes = [1, 32], strides = [1, 1]} : vector<8x128xf32> to vector<1x32xf32>
    %159 = vector.extract_strided_slice %156 {offsets = [2, 0], sizes = [1, 128], strides = [1, 1]} : vector<8x128xf32> to vector<1x128xf32>
    %160 = vector.extract_strided_slice %156 {offsets = [3, 0], sizes = [1, 128], strides = [1, 1]} : vector<8x128xf32> to vector<1x128xf32>
    %161 = vector.extract_strided_slice %156 {offsets = [4, 0], sizes = [1, 128], strides = [1, 1]} : vector<8x128xf32> to vector<1x128xf32>
    %162 = vector.extract_strided_slice %156 {offsets = [5, 0], sizes = [1, 32], strides = [1, 1]} : vector<8x128xf32> to vector<1x32xf32>
    %163 = vector.extract_strided_slice %156 {offsets = [6, 0], sizes = [1, 128], strides = [1, 1]} : vector<8x128xf32> to vector<1x128xf32>
    %164 = vector.extract_strided_slice %156 {offsets = [7, 0], sizes = [1, 32], strides = [1, 1]} : vector<8x128xf32> to vector<1x32xf32>
    %165 = vector.broadcast %157 : vector<1x32xf32> to vector<16x32xf32>
    %166 = arith.mulf %154, %165 : vector<16x32xf32>
    %167 = vector.broadcast %158 : vector<1x32xf32> to vector<16x32xf32>
    %168 = arith.addf %166, %167 : vector<16x32xf32>
    %169 = arith.truncf %168 : vector<16x32xf32> to vector<16x32xbf16>
    %cst_95 = arith.constant dense<0.000000e+00> : vector<48x32xf32>
    %170 = tpu.matmul %2, %168, %cst_95 {dimension_numbers = #tpu.dot_dimension_numbers<[1], [0], [0], [1], [0, 0, 1, 1], [], []>} : vector<48x16xf32>, vector<16x32xf32>, vector<48x32xf32> -> vector<48x32xf32>
    %c2_96 = arith.constant 2 : index
    %c0_97 = arith.constant 0 : index
    %c0_98 = arith.constant 0 : index
    %171 = vector.load %arg8[%c2_96, %c0_97, %c0_98] : memref<3x32x256xbf16, #tpu.memory_space<vmem>>, vector<1x32x256xbf16>
    %172 = vector.shape_cast %171 : vector<1x32x256xbf16> to vector<32x256xbf16>
    %cst_99 = arith.constant dense<0.000000e+00> : vector<16x256xf32>
    %173 = tpu.matmul %169, %172, %cst_99 {dimension_numbers = #tpu.dot_dimension_numbers<[1], [0], [0], [1], [0, 0, 1, 1], [], []>} : vector<16x32xbf16>, vector<32x256xbf16>, vector<16x256xf32> -> vector<16x256xf32>
    %174 = vector.extract_strided_slice %173 {offsets = [0, 0], sizes = [16, 128], strides = [1, 1]} : vector<16x256xf32> to vector<16x128xf32>
    %cst_100 = arith.constant dense<0.000000e+00> : vector<48x128xf32>
    %175 = tpu.matmul %2, %174, %cst_100 {dimension_numbers = #tpu.dot_dimension_numbers<[1], [0], [0], [1], [0, 0, 1, 1], [], []>} : vector<48x16xf32>, vector<16x128xf32>, vector<48x128xf32> -> vector<48x128xf32>
    %176 = vector.extract_strided_slice %173 {offsets = [0, 128], sizes = [16, 128], strides = [1, 1]} : vector<16x256xf32> to vector<16x128xf32>
    %cst_101 = arith.constant dense<0.000000e+00> : vector<48x128xf32>
    %177 = tpu.matmul %3, %176, %cst_101 {dimension_numbers = #tpu.dot_dimension_numbers<[1], [0], [0], [1], [0, 0, 1, 1], [], []>} : vector<48x16xf32>, vector<16x128xf32>, vector<48x128xf32> -> vector<48x128xf32>
    %c2_102 = arith.constant 2 : index
    %c0_103 = arith.constant 0 : index
    %c0_104 = arith.constant 0 : index
    %178 = vector.load %arg6[%c2_102, %c0_103, %c0_104] : memref<3x64x128xbf16, #tpu.memory_space<vmem>>, vector<1x64x128xbf16>
    %179 = vector.shape_cast %178 : vector<1x64x128xbf16> to vector<64x128xbf16>
    %cst_105 = arith.constant dense<0.000000e+00> : vector<48x128xf32>
    %180 = tpu.matmul %1, %179, %cst_105 {dimension_numbers = #tpu.dot_dimension_numbers<[1], [0], [0], [1], [0, 0, 1, 1], [], []>} : vector<48x64xbf16>, vector<64x128xbf16>, vector<48x128xf32> -> vector<48x128xf32>
    %181 = vector.broadcast %159 : vector<1x128xf32> to vector<48x128xf32>
    %182 = arith.addf %180, %181 : vector<48x128xf32>
    %cst_106 = arith.constant 0.000000e+00 : f32
    %183 = vector.broadcast %cst_106 : f32 to vector<48x128xf32>
    %184 = arith.maximumf %182, %183 : vector<48x128xf32>
    %185 = arith.truncf %184 : vector<48x128xf32> to vector<48x128xbf16>
    %c2_107 = arith.constant 2 : index
    %c0_108 = arith.constant 0 : index
    %c0_109 = arith.constant 0 : index
    %186 = vector.load %arg7[%c2_107, %c0_108, %c0_109] : memref<3x128x128xbf16, #tpu.memory_space<vmem>>, vector<1x128x128xbf16>
    %187 = vector.shape_cast %186 : vector<1x128x128xbf16> to vector<128x128xbf16>
    %cst_110 = arith.constant dense<0.000000e+00> : vector<48x128xf32>
    %188 = tpu.matmul %185, %187, %cst_110 {dimension_numbers = #tpu.dot_dimension_numbers<[1], [0], [0], [1], [0, 0, 1, 1], [], []>} : vector<48x128xbf16>, vector<128x128xbf16>, vector<48x128xf32> -> vector<48x128xf32>
    %189 = arith.addf %188, %175 : vector<48x128xf32>
    %190 = arith.addf %189, %177 : vector<48x128xf32>
    %191 = vector.broadcast %160 : vector<1x128xf32> to vector<48x128xf32>
    %192 = arith.addf %190, %191 : vector<48x128xf32>
    %cst_111 = arith.constant 0.000000e+00 : f32
    %193 = vector.broadcast %cst_111 : f32 to vector<48x128xf32>
    %194 = arith.maximumf %192, %193 : vector<48x128xf32>
    %195 = arith.truncf %194 : vector<48x128xf32> to vector<48x128xbf16>
    %c2_112 = arith.constant 2 : index
    %c0_113 = arith.constant 0 : index
    %c0_114 = arith.constant 0 : index
    %196 = vector.load %arg9[%c2_112, %c0_113, %c0_114] : memref<3x128x128xbf16, #tpu.memory_space<vmem>>, vector<1x128x128xbf16>
    %197 = vector.shape_cast %196 : vector<1x128x128xbf16> to vector<128x128xbf16>
    %cst_115 = arith.constant dense<0.000000e+00> : vector<48x128xf32>
    %198 = tpu.matmul %195, %197, %cst_115 {dimension_numbers = #tpu.dot_dimension_numbers<[1], [0], [0], [1], [0, 0, 1, 1], [], []>} : vector<48x128xbf16>, vector<128x128xbf16>, vector<48x128xf32> -> vector<48x128xf32>
    %199 = vector.broadcast %161 : vector<1x128xf32> to vector<48x128xf32>
    %200 = arith.addf %198, %199 : vector<48x128xf32>
    %cst_116 = arith.constant 0.000000e+00 : f32
    %201 = vector.broadcast %cst_116 : f32 to vector<48x128xf32>
    %202 = arith.maximumf %200, %201 : vector<48x128xf32>
    %203 = arith.truncf %202 : vector<48x128xf32> to vector<48x128xbf16>
    %c2_117 = arith.constant 2 : index
    %c0_118 = arith.constant 0 : index
    %c0_119 = arith.constant 0 : index
    %204 = vector.load %arg10[%c2_117, %c0_118, %c0_119] : memref<3x128x32xbf16, #tpu.memory_space<vmem>>, vector<1x128x32xbf16>
    %205 = vector.shape_cast %204 : vector<1x128x32xbf16> to vector<128x32xbf16>
    %cst_120 = arith.constant dense<0.000000e+00> : vector<48x32xf32>
    %206 = tpu.matmul %203, %205, %cst_120 {dimension_numbers = #tpu.dot_dimension_numbers<[1], [0], [0], [1], [0, 0, 1, 1], [], []>} : vector<48x128xbf16>, vector<128x32xbf16>, vector<48x32xf32> -> vector<48x32xf32>
    %207 = vector.broadcast %162 : vector<1x32xf32> to vector<48x32xf32>
    %208 = arith.addf %206, %207 : vector<48x32xf32>
    %209 = arith.mulf %170, %208 : vector<48x32xf32>
    %cst_121 = arith.constant dense<0.000000e+00> : vector<16x32xf32>
    %210 = tpu.matmul %4, %209, %cst_121 {dimension_numbers = #tpu.dot_dimension_numbers<[1], [0], [0], [1], [0, 0, 1, 1], [], []>} : vector<16x48xf32>, vector<48x32xf32>, vector<16x32xf32> -> vector<16x32xf32>
    %c2_122 = arith.constant 2 : index
    %c0_123 = arith.constant 0 : index
    %c0_124 = arith.constant 0 : index
    %211 = vector.load %arg11[%c2_122, %c0_123, %c0_124] : memref<3x32x128xbf16, #tpu.memory_space<vmem>>, vector<1x32x128xbf16>
    %212 = vector.shape_cast %211 : vector<1x32x128xbf16> to vector<32x128xbf16>
    %cst_125 = arith.constant dense<0.000000e+00> : vector<16x128xf32>
    %213 = tpu.matmul %169, %212, %cst_125 {dimension_numbers = #tpu.dot_dimension_numbers<[1], [0], [0], [1], [0, 0, 1, 1], [], []>} : vector<16x32xbf16>, vector<32x128xbf16>, vector<16x128xf32> -> vector<16x128xf32>
    %214 = arith.truncf %210 : vector<16x32xf32> to vector<16x32xbf16>
    %c2_126 = arith.constant 2 : index
    %c0_127 = arith.constant 0 : index
    %c0_128 = arith.constant 0 : index
    %215 = vector.load %arg12[%c2_126, %c0_127, %c0_128] : memref<3x32x128xbf16, #tpu.memory_space<vmem>>, vector<1x32x128xbf16>
    %216 = vector.shape_cast %215 : vector<1x32x128xbf16> to vector<32x128xbf16>
    %cst_129 = arith.constant dense<0.000000e+00> : vector<16x128xf32>
    %217 = tpu.matmul %214, %216, %cst_129 {dimension_numbers = #tpu.dot_dimension_numbers<[1], [0], [0], [1], [0, 0, 1, 1], [], []>} : vector<16x32xbf16>, vector<32x128xbf16>, vector<16x128xf32> -> vector<16x128xf32>
    %218 = arith.addf %213, %217 : vector<16x128xf32>
    %219 = vector.broadcast %163 : vector<1x128xf32> to vector<16x128xf32>
    %220 = arith.addf %218, %219 : vector<16x128xf32>
    %cst_130 = arith.constant 0.000000e+00 : f32
    %221 = vector.broadcast %cst_130 : f32 to vector<16x128xf32>
    %222 = arith.maximumf %220, %221 : vector<16x128xf32>
    %223 = arith.truncf %222 : vector<16x128xf32> to vector<16x128xbf16>
    %c2_131 = arith.constant 2 : index
    %c0_132 = arith.constant 0 : index
    %c0_133 = arith.constant 0 : index
    %224 = vector.load %arg13[%c2_131, %c0_132, %c0_133] : memref<3x128x32xbf16, #tpu.memory_space<vmem>>, vector<1x128x32xbf16>
    %225 = vector.shape_cast %224 : vector<1x128x32xbf16> to vector<128x32xbf16>
    %cst_134 = arith.constant dense<0.000000e+00> : vector<16x32xf32>
    %226 = tpu.matmul %223, %225, %cst_134 {dimension_numbers = #tpu.dot_dimension_numbers<[1], [0], [0], [1], [0, 0, 1, 1], [], []>} : vector<16x128xbf16>, vector<128x32xbf16>, vector<16x32xf32> -> vector<16x32xf32>
    %227 = vector.broadcast %164 : vector<1x32xf32> to vector<16x32xf32>
    %228 = arith.addf %226, %227 : vector<16x32xf32>
    %229 = arith.addf %228, %154 : vector<16x32xf32>
    %c0_135 = arith.constant 0 : index
    %c0_136 = arith.constant 0 : index
    %230 = vector.load %arg14[%c0_135, %c0_136] : memref<16x32xf32, #tpu.memory_space<vmem>>, vector<16x32xf32>
    tpu.vector_store %arg14[%c0_135, %c0_136], %229 {strides = array<i32>} : memref<16x32xf32, #tpu.memory_space<vmem>>, vector<16x32xf32>,
    return
  }
}

</mosaic_0001>

<bundles_post_ra>
// kernel: smooth_conv_block_pallas.1
= control target key start
LH: loop header
LB: loop body
LE: loop exit
PB: predicated region body
PF: predicated region fallthrough
CT: control target
= control target key end

     0   :  { %v72_v0 = vlaneseq  ;;  %vm85_vm0 = vcmask 130048   ;;  %vm223_vm1 = vcmask 261120   ;;  %v5177_v24 = vmov 0   ;;  %s6374_s0 = inlined_call_operand.vmem [shape: f32[16,32], index: 0, kind: input, shape index: {}]   ;;  %s6375_s1 = inlined_call_operand.vmem [shape: bf16[48,64], index: 1, kind: input, shape index: {}]   ;;  %s6376_s2 = inlined_call_operand.vmem [shape: f32[48,16], index: 2, kind: input, shape index: {}]   ;;  %s6377_s3 = inlined_call_operand.vmem [shape: f32[48,16], index: 3, kind: input, shape index: {}]   ;;  %s6378_s4 = inlined_call_operand.vmem [shape: f32[16,48], index: 4, kind: input, shape index: {}]   ;;  %s6379_s5 = inlined_call_operand.vmem [shape: f32[3,8,128], index: 5, kind: input, shape index: {}]   ;;  %s6380_s6 = inlined_call_operand.vmem [shape: bf16[3,64,128], index: 6, kind: input, shape index: {}]   ;;  %s6381_s7 = inlined_call_operand.vmem [shape: bf16[3,128,128], index: 7, kind: input, shape index: {}]   ;;  %s6382_s8 = inlined_call_operand.vmem [shape: bf16[3,32,256], index: 8, kind: input, shape index: {}]   ;;  %s6383_s9 = inlined_call_operand.vmem [shape: bf16[3,128,128], index: 9, kind: input, shape index: {}]   ;;  %s6384_s10 = inlined_call_operand.vmem [shape: bf16[3,128,32], index: 10, kind: input, shape index: {}]   ;;  %s6385_s11 = inlined_call_operand.vmem [shape: bf16[3,32,128], index: 11, kind: input, shape index: {}]   ;;  %s6386_s12 = inlined_call_operand.vmem [shape: bf16[3,32,128], index: 12, kind: input, shape index: {}]   ;;  %s6387_s13 = inlined_call_operand.vmem [shape: bf16[3,128,32], index: 13, kind: input, shape index: {}]   ;;  %s6388_s14 = inlined_call_operand.hbm [shape: f32[16,32], index: 14, kind: output, shape index: {}]  }
   0x1   :  { %v57_v1 = vld [vmem:[%s6376_s2] sm:$0xff]  ;;  %v50_v6 = vld [vmem:[%s6374_s0 + $0x8] sm:$0xff]  ;;  %v4996_v14 = vld [vmem:[%s6382_s8 + $0x14] ss:$8 sps:$4 sm:$0xff]  }
   0x2   :  { %v5261_v2 = vshrl.u32 %v72_v0, 7  ;;  %4410 = vmatprep.mubr.msk.f32.mxu1 %vm85_vm0, %v57_v1  ;;  %4423 = vmatprep.mubr.msk.f32.mxu0 %vm85_vm0, %v57_v1  ;;  %v5268_v3 = vld [vmem:[%s6379_s5] sm:$0xff]  ;;  %v58_v15 = vld [vmem:[%s6376_s2 + $0x8] sm:$0xff]  ;;  %v4994_v16 = vld [vmem:[%s6382_s8 + $0x10] ss:$8 sps:$4 sm:$0xff]  }
   0x3   :  { %v49_v7 = vld [vmem:[%s6374_s0] sm:$0xff]  ;;  %v59_v17 = vld [vmem:[%s6376_s2 + $0x10] sm:$0xff]  ;;  %v60_v19 = vld [vmem:[%s6376_s2 + $0x18] sm:$0xff] }
   0x4   :  { %v5271_v4 = vsub.s32 0, %v5261_v2  ;;  %v5274_v5 = vsub.s32 1, %v5261_v2  ;;  %v4999_v18 = vld [vmem:[%s6382_s8 + $0x4] ss:$8 sps:$4 sm:$0xff]   ;;  %v4997_v20 = vld [vmem:[%s6382_s8] ss:$8 sps:$4 sm:$0xff]  }
   0x5   :  { %v61_v21 = vld [vmem:[%s6376_s2 + $0x20] sm:$0xff]  ;;  %v62_v22 = vld [vmem:[%s6376_s2 + $0x28] sm:$0xff] }
   0x6   :  { %v75_v8 = vrot.slane %v5268_v3, %v5271_v4  ;;  %v81_v9 = vrot.slane %v5268_v3, %v5274_v5 }
   0x8   :  { %v77_v10 = vmul.f32 %v75_v8, %v50_v6  ;;  %v76_v11 = vmul.f32 %v75_v8, %v49_v7 }
   0xa   :  { %v83_v12 = vadd.f32 %v81_v9, %v77_v10  ;;  %v82_v13 = vadd.f32 %v81_v9, %v76_v11 }
   0xc   :  { %4406 = vmatprep.subr.mxu1 %v83_v12  ;;  %v5317_v23 = vpack.c.bf16 %v83_v12, %v82_v13 }
   0xd   :  { %4407 = vmatpush3.msra.mxu1 %v83_v12 }
   0xe   :  { %4408 = vmatprep.subr.mxu1 %v82_v13 }
   0xf   :  { %4409 = vmatpush3.msra.mxu1 %v82_v13 }
  0x10   :  { %4411 = vmatmul.mubr.msk.f32.vlgmr.msra.gmra.mxu1 %vm85_vm0, %v58_v15  ;;  %239 = vmatprep.subr.bf16.mxu1 %v4996_v14 }
  0x11   :  { %4413 = vmatprep.mubr.msk.f32.mxu1 %vm85_vm0, %v59_v17  ;;  %240 = vmatpush1.bf16.msra.mxu1 %v4994_v16 }
  0x12   :  { %241 = vmatprep.subr.bf16.mxu1 %v4999_v18 }
  0x14   :  { %4414 = vmatmul.mubr.msk.f32.gmra.mxu1 %vm85_vm0, %v60_v19 }
  0x15   :  { %4416 = vmatprep.mubr.msk.f32.mxu1 %vm85_vm0, %v61_v21  ;;  %242 = vmatpush1.bf16.msra.mxu1 %v4997_v20 }
  0x18   :  { %4417 = vmatmul.mubr.msk.f32.gmra.mxu1 %vm85_vm0, %v62_v22 }
  0x19   :  { %259 = vmatprep.mubr.bf16.mxu1 %v5177_v24 }
  0x1c   :  { %3772 = vmatmul.mubr.msk.bf16.vlgmr.msra.gmra.mxu1 %vm223_vm1, %v5317_v23 }
  0x1d   :  { %19 = vsyncpa [#allocation3], 0  ;;  %v5326_v25 = vld [vmem:[%s6377_s3] sm:$0xff]  ;;  %v5000_v36 = vld [vmem:[%s6380_s6 + $0x18] sm:$0xff]   ;;  %v5178_v38 = vmov 0.0   ;;  %vm5179_vm2 = vmmov 0  }
  0x1e   :  { %4436 = vmatprep.mubr.msk.f32.mxu1 %vm85_vm0, %v5326_v25  ;;  %v5349_v37 = vld [vmem:[%s6377_s3 + $0x8] sm:$0xff]  ;;  %v5007_v39 = vld [vmem:[%s6381_s7 + $0x38] sm:$0xff]   ;;  %v5001_v40 = vld [vmem:[%s6380_s6 + $0x10] sm:$0xff]   ;;  %vm529_vm3 = vcmask 523264   ;;  %v5490_v6 = vsub.s32 2, %v5261_v2  ;;  %vm1016_vm4 = vcmask 392192  }
  0x1f   :  { %v5002_v41 = vld [vmem:[%s6380_s6 + $0x8] sm:$0xff]   ;;  %v5003_v42 = vld [vmem:[%s6380_s6] sm:$0xff]   ;;  %v5399_v45 = vld [vmem:[%s6375_s1 + $0x10] sm:$0xff]  }
  0x20   :  { %v5380_v43 = vld [vmem:[%s6375_s1] sm:$0xff]   ;;  %v5390_v44 = vld [vmem:[%s6375_s1 + $0x8] sm:$0xff]   ;;  %v5008_v46 = vld [vmem:[%s6381_s7 + $0x30] sm:$0xff]   ;;  %v489_v8 = vrot.slane %v5268_v3, %v5490_v6 }
  0x21   :  { %v5009_v47 = vld [vmem:[%s6381_s7 + $0x28] sm:$0xff]   ;;  %v5010_v48 = vld [vmem:[%s6381_s7 + $0x20] sm:$0xff]   ;;  %v5011_v49 = vld [vmem:[%s6381_s7 + $0x18] sm:$0xff]  }
  0x22   :  { %v5423_v50 = vld [vmem:[%s6377_s3 + $0x10] sm:$0xff]  ;;  %v5434_v52 = vld [vmem:[%s6377_s3 + $0x18] sm:$0xff]  ;;  %v5013_v53 = vld [vmem:[%s6381_s7 + $0x8] sm:$0xff]  }
  0x23   :  { %v5012_v51 = vld [vmem:[%s6381_s7 + $0x10] sm:$0xff]   ;;  %v5445_v54 = vld [vmem:[%s6377_s3 + $0x20] sm:$0xff]  ;;  %v5452_v55 = vld [vmem:[%s6377_s3 + $0x28] sm:$0xff] }
  0x24   :  { %v5014_v56 = vld [vmem:[%s6381_s7] sm:$0xff]   ;;  %v5015_v57 = vld [vmem:[%s6383_s9 + $0x38] sm:$0xff]   ;;  %v5016_v58 = vld [vmem:[%s6383_s9 + $0x30] sm:$0xff]  }
  0x25   :  { %v5017_v59 = vld [vmem:[%s6383_s9 + $0x28] sm:$0xff]   ;;  %v5018_v60 = vld [vmem:[%s6383_s9 + $0x20] sm:$0xff]  }
  0xd0   :  { %v5330_v26 = vpop.f32.mrf.mxu1 }
  0xd2   :  { %v5332_v27 = vpop.f32.mrf.mxu1 }
  0xd4   :  { %v5334_v28 = vpop.f32.mrf.mxu1 }
  0xd6   :  { %v5336_v29 = vpop.f32.mrf.mxu1 }
  0xd8   :  { %v5338_v30 = vpop.f32.mrf.mxu1 }
  0xda   :  { %v5340_v31 = vpop.f32.mrf.mxu1 }
  0xdc   :  { %v261_v32 = vpop.f32.mrf.mxu1 }
  0xde   :  { %v263_v33 = vpop.f32.mrf.mxu1 }
  0xe0   :  { %v265_v34 = vpop.f32.mrf.mxu1 }
  0xe1   :  { %4419 = vmatprep.subr.mxu0 %v265_v34 }
  0xe2   :  { %v267_v35 = vpop.f32.mrf.mxu1  ;;  %4420 = vmatpush3.msra.mxu0 %v265_v34 }
  0xe3   :  { %4421 = vmatprep.subr.mxu0 %v261_v32  ;;  %4432 = vmatprep.subr.mxu1 %v267_v35 }
  0xe4   :  { %4422 = vmatpush3.msra.mxu0 %v261_v32  ;;  %4433 = vmatpush3.msra.mxu1 %v267_v35 }
  0xe5   :  { %4424 = vmatmul.mubr.msk.f32.vlgmr.msra.gmra.mxu0 %vm85_vm0, %v58_v15  ;;  %4434 = vmatprep.subr.mxu1 %v263_v33 }
  0xe6   :  { %4445 = vmatprep.subr.bf16.mxu0 %v5178_v38  ;;  %4435 = vmatpush3.msra.mxu1 %v263_v33 }
  0xe7   :  { %4446 = vmatpush3.bf16.msra.mxu0 %v5000_v36  ;;  %4426 = vmatprep.mubr.msk.f32.mxu0 %vm85_vm0, %v59_v17 }
  0xe8   :  { %4447 = vmatprep.subr.bf16.mxu0 %v5178_v38  ;;  %4437 = vmatmul.mubr.msk.f32.vlgmr.msra.gmra.mxu1 %vm85_vm0, %v5349_v37 }
  0xe9   :  { %4427 = vmatmul.mubr.msk.f32.gmra.mxu0 %vm85_vm0, %v60_v19  ;;  %4465 = vmatprep.subr.bf16.mxu1 %v5178_v38 }
  0xea   :  { %4429 = vmatprep.mubr.msk.f32.mxu0 %vm85_vm0, %v61_v21  ;;  %4466 = vmatpush3.bf16.msra.mxu1 %v5007_v39 }
  0xeb   :  { %4448 = vmatpush3.bf16.msra.mxu0 %v5001_v40  ;;  %4467 = vmatprep.subr.bf16.mxu1 %v5178_v38 }
  0xec   :  { %4449 = vmatprep.subr.bf16.mxu0 %v5178_v38  ;;  %4439 = vmatprep.mubr.msk.f32.mxu1 %vm85_vm0, %v5423_v50 }
  0xed   :  { %4430 = vmatmul.mubr.msk.f32.gmra.mxu0 %vm85_vm0, %v62_v22  ;;  %4440 = vmatmul.mubr.msk.f32.gmra.mxu1 %vm85_vm0, %v5434_v52 }
  0xee   :  { %4453 = vmatprep.mubr.msk.bf16.mxu0 %vm5179_vm2, %v5178_v38  ;;  %4468 = vmatpush3.bf16.msra.mxu1 %v5008_v46 }
  0xef   :  { %4450 = vmatpush3.bf16.msra.mxu0 %v5002_v41  ;;  %4469 = vmatprep.subr.bf16.mxu1 %v5178_v38 }
  0xf0   :  { %4451 = vmatprep.subr.bf16.mxu0 %v5178_v38  ;;  %4442 = vmatprep.mubr.msk.f32.mxu1 %vm85_vm0, %v5445_v54 }
  0xf1   :  { %4443 = vmatmul.mubr.msk.f32.gmra.mxu1 %vm85_vm0, %v5452_v55 }
  0xf2   :  { %4470 = vmatpush3.bf16.msra.mxu1 %v5009_v47  ;;  %4481 = vmatprep.mubr.msk.bf16.mxu1 %vm5179_vm2, %v5178_v38 }
  0xf3   :  { %4452 = vmatpush3.bf16.msra.mxu0 %v5003_v42  ;;  %4471 = vmatprep.subr.bf16.mxu1 %v5178_v38 }
  0xf4   :  { %4493 = vmatprep.subr.bf16.mxu0 %v5178_v38 }
  0xf6   :  { %4454 = vmatmul.mubr.msk.bf16.vlgmr.msra.gmra.mxu0 %vm529_vm3, %v5380_v43  ;;  %4472 = vmatpush3.bf16.msra.mxu1 %v5010_v48 }
  0xf7   :  { %4457 = vmatprep.mubr.msk.bf16.mxu0 %vm5179_vm2, %v5178_v38  ;;  %4473 = vmatprep.subr.bf16.mxu1 %v5178_v38 }
  0xf8   :  { %4494 = vmatpush3.bf16.msra.mxu0 %v5015_v57  ;;  %v5022_v57 = vld [vmem:[%s6383_s9] sm:$0xff]  }
  0xf9   :  { %4495 = vmatprep.subr.bf16.mxu0 %v5178_v38 }
  0xfa   :  { %4474 = vmatpush3.bf16.msra.mxu1 %v5011_v49 }
  0xfb   :  { %4475 = vmatprep.subr.bf16.mxu1 %v5178_v38 }
  0xfc   :  { %4496 = vmatpush3.bf16.msra.mxu0 %v5016_v58  ;;  %v5023_v58 = vld [vmem:[%s6384_s10 + $0x38] sm:$0xff]  }
  0xfd   :  { %4497 = vmatprep.subr.bf16.mxu0 %v5178_v38 }
  0xfe   :  { %4458 = vmatmul.mubr.msk.bf16.gmra.mxu0 %vm529_vm3, %v5390_v44  ;;  %4476 = vmatpush3.bf16.msra.mxu1 %v5012_v51  ;;  %v5019_v51 = vld [vmem:[%s6383_s9 + $0x18] sm:$0xff]  }
  0xff   :  { %4461 = vmatprep.mubr.msk.bf16.mxu0 %vm5179_vm2, %v5178_v38  ;;  %4477 = vmatprep.subr.bf16.mxu1 %v5178_v38 }
 0x100   :  { %4498 = vmatpush3.bf16.msra.mxu0 %v5017_v59  ;;  %v5024_v59 = vld [vmem:[%s6384_s10 + $0x30] sm:$0xff]  }
 0x101   :  { %4499 = vmatprep.subr.bf16.mxu0 %v5178_v38 }
 0x102   :  { %4478 = vmatpush3.bf16.msra.mxu1 %v5013_v53  ;;  %v5020_v53 = vld [vmem:[%s6383_s9 + $0x10] sm:$0xff]  }
 0x103   :  { %4479 = vmatprep.subr.bf16.mxu1 %v5178_v38 }
 0x104   :  { %4500 = vmatpush3.bf16.msra.mxu0 %v5018_v60  ;;  %v5025_v60 = vld [vmem:[%s6384_s10 + $0x28] sm:$0xff]  }
 0x105   :  { %4501 = vmatprep.subr.bf16.mxu0 %v5178_v38 }
 0x106   :  { %4462 = vmatmul.mubr.msk.bf16.gmra.mxu0 %vm529_vm3, %v5399_v45  ;;  %4480 = vmatpush3.bf16.msra.mxu1 %v5014_v56  ;;  %v5021_v56 = vld [vmem:[%s6383_s9 + $0x8] sm:$0xff]  }
 0x107   :  { %4509 = vmatprep.mubr.msk.bf16.mxu0 %vm5179_vm2, %v5178_v38  ;;  %4521 = vmatprep.subr.bf16.mxu1 %v5178_v38 }
 0x108   :  { %4502 = vmatpush3.bf16.msra.mxu0 %v5019_v51 }
 0x109   :  { %4503 = vmatprep.subr.bf16.mxu0 %v5178_v38 }
 0x10c   :  { %4504 = vmatpush3.bf16.msra.mxu0 %v5020_v53 }
 0x10d   :  { %4505 = vmatprep.subr.bf16.mxu0 %v5178_v38 }
 0x110   :  { %4506 = vmatpush3.bf16.msra.mxu0 %v5021_v56 }
 0x111   :  { %4507 = vmatprep.subr.bf16.mxu0 %v5178_v38 }
 0x114   :  { %4508 = vmatpush3.bf16.msra.mxu0 %v5022_v57 }
 0x1a5   :  { %v5479_v61 = vpop.f32.mrf.mxu0 }
 0x1a7   :  { %v5481_v62 = vpop.f32.mrf.mxu0 }
 0x1a9   :  { %v5483_v63 = vpop.f32.mrf.mxu0 }
 0x1ab   :  { %v5485_v0 = vpop.f32.mrf.mxu0 }
 0x1ad   :  { %v5487_v1 = vpop.f32.mrf.mxu0 }
 0x1af   :  { %v5492_v7 = vpop.f32.mrf.mxu0 }
 0x1b6   :  { %v573_v9 = vpop.f32.mrf.mxu0 }
 0x1b7   :  { %v574_v11 = vadd.f32 %v573_v9, %v489_v8  ;;  %v5027_v9 = vld [vmem:[%s6384_s10 + $0x18] sm:$0xff]  }
 0x1b8   :  { %v4455_v10 = vpop.f32.mrf.mxu0 }
 0x1b9   :  { %v596_v15 = vmax.f32 %v574_v11, 0.0  ;;  %v4438_v10 = vpop.f32.mrf.mxu1 }
 0x1ba   :  { %v576_v12 = vpop.f32.mrf.mxu0 }
 0x1bb   :  { %v577_v13 = vadd.f32 %v576_v12, %v489_v8  ;;  %v449_v11 = vpop.f32.mrf.mxu1 }
 0x1bc   :  { %v4456_v14 = vpop.f32.mrf.mxu0 }
 0x1bd   :  { %v597_v16 = vmax.f32 %v577_v13, 0.0  ;;  %v4441_v12 = vpop.f32.mrf.mxu1 }
 0x1be   :  { %v581_v17 = vpop.f32.mrf.mxu0 }
 0x1bf   :  { %v602_v18 = vpack.c.bf16 %v597_v16, %v596_v15  ;;  %v582_v20 = vadd.f32 %v581_v17, %v489_v8  ;;  %v459_v13 = vpop.f32.mrf.mxu1  ;;  %v5538_v16 = vsub.s32 3, %v5261_v2 }
 0x1c0   :  { %v4459_v19 = vpop.f32.mrf.mxu0 }
 0x1c1   :  { %4482 = vmatmul.mubr.bf16.vlgmr.msra.gmra.mxu1 %v602_v18  ;;  %v598_v33 = vmax.f32 %v582_v20, 0.0  ;;  %v4444_v14 = vpop.f32.mrf.mxu1 }
 0x1c2   :  { %v584_v21 = vpop.f32.mrf.mxu0  ;;  %4485 = vmatprep.mubr.msk.bf16.mxu1 %vm5179_vm2, %v5178_v38  ;;  %4522 = vmatpush3.bf16.msra.mxu1 %v5023_v58 }
 0x1c3   :  { %v585_v22 = vadd.f32 %v584_v21, %v489_v8  ;;  %4523 = vmatprep.subr.bf16.mxu1 %v5178_v38  ;;  %v469_v15 = vpop.f32.mrf.mxu1  ;;  %v735_v21 = vrot.slane %v5268_v3, %v5538_v16 }
 0x1c4   :  { %v4460_v32 = vpop.f32.mrf.mxu0 }
 0x1c5   :  { %v599_v34 = vmax.f32 %v585_v22, 0.0 }
 0x1c6   :  { %v589_v35 = vpop.f32.mrf.mxu0  ;;  %4524 = vmatpush3.bf16.msra.mxu1 %v5024_v59 }
 0x1c7   :  { %v603_v36 = vpack.c.bf16 %v599_v34, %v598_v33  ;;  %v590_v40 = vadd.f32 %v589_v35, %v489_v8  ;;  %4525 = vmatprep.subr.bf16.mxu1 %v5178_v38 }
 0x1c8   :  { %v4463_v39 = vpop.f32.mrf.mxu0 }
 0x1c9   :  { %4486 = vmatmul.mubr.bf16.gmra.mxu1 %v603_v36  ;;  %v600_v47 = vmax.f32 %v590_v40, 0.0 }
 0x1ca   :  { %v592_v41 = vpop.f32.mrf.mxu0  ;;  %4489 = vmatprep.mubr.msk.bf16.mxu1 %vm5179_vm2, %v5178_v38  ;;  %4526 = vmatpush3.bf16.msra.mxu1 %v5025_v60 }
 0x1cb   :  { %v593_v42 = vadd.f32 %v592_v41, %v489_v8  ;;  %v5026_v8 = vld [vmem:[%s6384_s10 + $0x20] sm:$0xff]   ;;  %4527 = vmatprep.subr.bf16.mxu1 %v5178_v38 }
 0x1cc   :  { %v4464_v46 = vpop.f32.mrf.mxu0 }
 0x1cd   :  { %v601_v48 = vmax.f32 %v593_v42, 0.0 }
 0x1ce   :  { %4528 = vmatpush3.bf16.msra.mxu1 %v5026_v8 }
 0x1cf   :  { %v604_v49 = vpack.c.bf16 %v601_v48, %v600_v47  ;;  %4529 = vmatprep.subr.bf16.mxu1 %v5178_v38 }
 0x1d1   :  { %4490 = vmatmul.mubr.bf16.gmra.mxu1 %v604_v49 }
 0x1d2   :  { %4537 = vmatprep.mubr.msk.bf16.mxu1 %vm5179_vm2, %v5178_v38  ;;  %4530 = vmatpush3.bf16.msra.mxu1 %v5027_v9 }
 0x1d3   :  { %4531 = vmatprep.subr.bf16.mxu1 %v5178_v38 }
 0x281   :  { %v703_v17 = vpop.f32.mrf.mxu1 }
 0x282   :  { %v704_v18 = vadd.f32 %v703_v17, %v5481_v62 }
 0x283   :  { %v4483_v19 = vpop.f32.mrf.mxu1 }
 0x284   :  { %v726_v20 = vadd.f32 %v704_v18, %v449_v11 }
 0x285   :  { %v706_v22 = vpop.f32.mrf.mxu1 }
 0x286   :  { %v707_v32 = vadd.f32 %v5479_v61, %v706_v22  ;;  %v736_v34 = vadd.f32 %v735_v21, %v726_v20  ;;  %v5570_v20 = vld [vmem:[%s6379_s5] sm:$0xff] }
 0x287   :  { %v4484_v33 = vpop.f32.mrf.mxu1 }
 0x288   :  { %v727_v35 = vadd.f32 %v4438_v10, %v707_v32  ;;  %v742_v42 = vmax.f32 %v736_v34, 0.0 }
 0x289   :  { %v711_v36 = vpop.f32.mrf.mxu1 }
 0x28a   :  { %v737_v39 = vadd.f32 %v735_v21, %v727_v35  ;;  %v712_v40 = vadd.f32 %v711_v36, %v5485_v0 }
 0x28b   :  { %v4487_v41 = vpop.f32.mrf.mxu1 }
 0x28c   :  { %v743_v46 = vmax.f32 %v737_v39, 0.0  ;;  %v728_v47 = vadd.f32 %v712_v40, %v459_v13 }
 0x28d   :  { %v714_v62 = vpop.f32.mrf.mxu1 }
 0x28e   :  { %v748_v48 = vpack.c.bf16 %v743_v46, %v742_v42  ;;  %v715_v49 = vadd.f32 %v5483_v63, %v714_v62  ;;  %v738_v3 = vadd.f32 %v735_v21, %v728_v47 }
 0x28f   :  { %v4488_v51 = vpop.f32.mrf.mxu1 }
 0x290   :  { %v729_v53 = vadd.f32 %v4441_v12, %v715_v49  ;;  %4510 = vmatmul.mubr.bf16.vlgmr.msra.gmra.mxu0 %v748_v48  ;;  %v744_v58 = vmax.f32 %v738_v3, 0.0 }
 0x291   :  { %v719_v61 = vpop.f32.mrf.mxu1  ;;  %4513 = vmatprep.mubr.msk.bf16.mxu0 %vm5179_vm2, %v5178_v38 }
 0x292   :  { %v739_v56 = vadd.f32 %v735_v21, %v729_v53  ;;  %v720_v57 = vadd.f32 %v719_v61, %v5492_v7  ;;  %v5028_v7 = vld [vmem:[%s6384_s10 + $0x10] sm:$0xff]  }
 0x293   :  { %v4491_v0 = vpop.f32.mrf.mxu1  ;;  %4532 = vmatpush3.bf16.msra.mxu1 %v5028_v7 }
 0x294   :  { %v745_v59 = vmax.f32 %v739_v56, 0.0  ;;  %v730_v60 = vadd.f32 %v720_v57, %v469_v15  ;;  %4533 = vmatprep.subr.bf16.mxu1 %v5178_v38  ;;  %v5565_v15 = vsub.s32 4, %v5261_v2 }
 0x295   :  { %v722_v8 = vpop.f32.mrf.mxu1 }
 0x296   :  { %v723_v9 = vadd.f32 %v5487_v1, %v722_v8  ;;  %v749_v10 = vpack.c.bf16 %v745_v59, %v744_v58  ;;  %v740_v11 = vadd.f32 %v735_v21, %v730_v60  ;;  %v5029_v1 = vld [vmem:[%s6384_s10 + $0x8] sm:$0xff]  }
 0x297   :  { %v4492_v63 = vpop.f32.mrf.mxu1  ;;  %4534 = vmatpush3.bf16.msra.mxu1 %v5029_v1  ;;  %v5588_v1 = vsub.s32 5, %v5261_v2 }
 0x298   :  { %v731_v13 = vadd.f32 %v4444_v14, %v723_v9  ;;  %4514 = vmatmul.mubr.bf16.gmra.mxu0 %v749_v10  ;;  %v746_v17 = vmax.f32 %v740_v11, 0.0  ;;  %4535 = vmatprep.subr.bf16.mxu1 %v5178_v38  ;;  %v5030_v14 = vld [vmem:[%s6384_s10] sm:$0xff]  }
 0x299   :  { %4517 = vmatprep.mubr.msk.bf16.mxu0 %vm5179_vm2, %v5178_v38  ;;  %v5583_v10 = vld [vmem:[%s6378_s4] sm:$0xff] }
 0x29a   :  { %v741_v12 = vadd.f32 %v735_v21, %v731_v13  ;;  %v770_v21 = vrot.slane %v5570_v20, %v5565_v15 }
 0x29b   :  { %4536 = vmatpush3.bf16.msra.mxu1 %v5030_v14 }
 0x29c   :  { %v747_v18 = vmax.f32 %v741_v12, 0.0  ;;  %4580 = vmatprep.subr.bf16.mxu1 %v5178_v38 }
 0x29e   :  { %v750_v19 = vpack.c.bf16 %v747_v18, %v746_v17 }
 0x2a0   :  { %4518 = vmatmul.mubr.bf16.gmra.mxu0 %v750_v19 }
 0x2a1   :  { %4561 = vmatprep.mubr.msk.f32.mxu0 %vm1016_vm4, %v5583_v10 }
 0x350   :  { %v853_v22 = vpop.f32.mrf.mxu0 }
 0x351   :  { %v854_v33 = vadd.f32 %v853_v22, %v770_v21  ;;  %v904_v22 = vrot.slane %v5570_v20, %v5588_v1 }
 0x352   :  { %v4511_v32 = vpop.f32.mrf.mxu0 }
 0x353   :  { %v876_v39 = vmax.f32 %v854_v33, 0.0 }
 0x354   :  { %v856_v34 = vpop.f32.mrf.mxu0 }
 0x355   :  { %v857_v35 = vadd.f32 %v856_v34, %v770_v21 }
 0x356   :  { %v4512_v36 = vpop.f32.mrf.mxu0 }
 0x357   :  { %v877_v40 = vmax.f32 %v857_v35, 0.0 }
 0x358   :  { %v861_v41 = vpop.f32.mrf.mxu0 }
 0x359   :  { %v882_v42 = vpack.c.bf16 %v877_v40, %v876_v39  ;;  %v862_v47 = vadd.f32 %v861_v41, %v770_v21 }
 0x35a   :  { %v4515_v46 = vpop.f32.mrf.mxu0 }
 0x35b   :  { %4538 = vmatmul.mubr.bf16.vlgmr.msra.gmra.mxu1 %v882_v42  ;;  %v878_v51 = vmax.f32 %v862_v47, 0.0 }
 0x35c   :  { %v864_v62 = vpop.f32.mrf.mxu0  ;;  %4541 = vmatprep.mubr.msk.bf16.mxu1 %vm5179_vm2, %v5178_v38 }
 0x35d   :  { %v865_v48 = vadd.f32 %v864_v62, %v770_v21 }
 0x35e   :  { %v4516_v49 = vpop.f32.mrf.mxu0 }
 0x35f   :  { %v879_v3 = vmax.f32 %v865_v48, 0.0  ;;  %v5037_v49 = vld [vmem:[%s6387_s13 + $0x28] sm:$0xff]  }
 0x360   :  { %v869_v53 = vpop.f32.mrf.mxu0 }
 0x361   :  { %v883_v61 = vpack.c.bf16 %v879_v3, %v878_v51  ;;  %v870_v57 = vadd.f32 %v869_v53, %v770_v21  ;;  %v5033_v53 = vld [vmem:[%s6385_s11 + $0x8] sm:$0xff]  }
 0x362   :  { %v4519_v56 = vpop.f32.mrf.mxu0 }
 0x363   :  { %4542 = vmatmul.mubr.bf16.gmra.mxu1 %v883_v61  ;;  %v880_v60 = vmax.f32 %v870_v57, 0.0  ;;  %v5034_v56 = vld [vmem:[%s6385_s11] sm:$0xff]  }
 0x364   :  { %v872_v0 = vpop.f32.mrf.mxu0  ;;  %4545 = vmatprep.mubr.msk.bf16.mxu1 %vm5179_vm2, %v5178_v38  ;;  %v5643_v57 = vld [vmem:[%s6376_s2] sm:$0xff] }
 0x365   :  { %v873_v58 = vadd.f32 %v872_v0, %v770_v21  ;;  %v5038_v0 = vld [vmem:[%s6387_s13 + $0x20] sm:$0xff]  }
 0x366   :  { %v4520_v59 = vpop.f32.mrf.mxu0 }
 0x367   :  { %v881_v8 = vmax.f32 %v873_v58, 0.0  ;;  %v5039_v58 = vld [vmem:[%s6387_s13 + $0x18] sm:$0xff]   ;;  %v5041_v59 = vld [vmem:[%s6387_s13 + $0x8] sm:$0xff]  }
 0x369   :  { %v884_v9 = vpack.c.bf16 %v881_v8, %v880_v60  ;;  %v5042_v60 = vld [vmem:[%s6387_s13] sm:$0xff]  }
 0x36b   :  { %4546 = vmatmul.mubr.bf16.gmra.mxu1 %v884_v9 }
 0x36c   :  { %4596 = vmatprep.mubr.msk.bf16.mxu1 %vm5179_vm2, %v5178_v38 }
 0x41b   :  { %v987_v63 = vpop.f32.mrf.mxu1 }
 0x41c   :  { %v988_v47 = vadd.f32 %v987_v63, %v904_v22 }
 0x41d   :  { %v4539_v11 = vpop.f32.mrf.mxu1 }
 0x41e   :  { %v5667_v11 = vsub.s32 6, %v5261_v2 }
 0x41f   :  { %v990_v13 = vpop.f32.mrf.mxu1 }
 0x420   :  { %v991_v42 = vadd.f32 %v990_v13, %v904_v22 }
 0x421   :  { %v4540_v12 = vpop.f32.mrf.mxu1 }
 0x422   :  { %v1011_v48 = vmul.f32 %v5330_v26, %v991_v42  ;;  %v5032_v26 = vld [vmem:[%s6386_s12] sm:$0xff]   ;;  %v5685_v42 = vsub.s32 7, %v5261_v2 }
 0x423   :  { %v995_v17 = vpop.f32.mrf.mxu1 }
 0x424   :  { %v996_v40 = vadd.f32 %v995_v17, %v904_v22 }
 0x425   :  { %v4543_v18 = vpop.f32.mrf.mxu1 }
 0x426   :  { %v1012_v62 = vmul.f32 %v996_v40, %v5336_v29  ;;  %v5036_v29 = vld [vmem:[%s6387_s13 + $0x30] sm:$0xff]   ;;  %v1219_v18 = vrot.slane %v5570_v20, %v5667_v11  ;;  %v5046_v40 = vld [vmem:[%s6382_s8 + $0x20] ss:$8 sps:$4 sm:$0xff]  }
 0x427   :  { %v998_v19 = vpop.f32.mrf.mxu1 }
 0x428   :  { %v999_v36 = vadd.f32 %v998_v19, %v904_v22 }
 0x429   :  { %v4544_v7 = vpop.f32.mrf.mxu1 }
 0x42a   :  { %v1013_v46 = vmul.f32 %v5334_v28, %v999_v36  ;;  %v5031_v28 = vld [vmem:[%s6386_s12 + $0x8] sm:$0xff]   ;;  %v5045_v36 = vld [vmem:[%s6382_s8 + $0x34] ss:$8 sps:$4 sm:$0xff]  }
 0x42b   :  { %v1003_v14 = vpop.f32.mrf.mxu1 }
 0x42c   :  { %v1004_v33 = vadd.f32 %v1003_v14, %v904_v22 }
 0x42d   :  { %v4547_v21 = vpop.f32.mrf.mxu1 }
 0x42e   :  { %v1014_v41 = vmul.f32 %v1004_v33, %v5340_v31  ;;  %v5601_v31 = vld [vmem:[%s6378_s4 + $0x8] sm:$0xff] }
 0x42f   :  { %v1006_v32 = vpop.f32.mrf.mxu1 }
 0x430   :  { %v1007_v34 = vadd.f32 %v1006_v32, %v904_v22 }
 0x431   :  { %v4548_v35 = vpop.f32.mrf.mxu1 }
 0x432   :  { %v1015_v39 = vmul.f32 %v5338_v30, %v1007_v34  ;;  %v1010_v30 = vmul.f32 %v988_v47, %v5332_v27  ;;  %v5035_v27 = vld [vmem:[%s6387_s13 + $0x38] sm:$0xff]  }
 0x433   :  { %4581 = vmatpush3.bf16.msra.mxu1 %v5035_v27 }
 0x434   :  { %4549 = vmatprep.subr.mxu0 %v1015_v39  ;;  %4582 = vmatprep.subr.bf16.mxu1 %v5178_v38 }
 0x435   :  { %4550 = vmatpush3.msra.mxu0 %v1015_v39  ;;  %v5043_v39 = vld [vmem:[%s6382_s8 + $0x30] ss:$8 sps:$4 sm:$0xff]  }
 0x436   :  { %4551 = vmatprep.subr.mxu0 %v1014_v41 }
 0x437   :  { %4552 = vmatpush3.msra.mxu0 %v1014_v41  ;;  %4583 = vmatpush3.bf16.msra.mxu1 %v5036_v29  ;;  %v5048_v41 = vld [vmem:[%s6382_s8 + $0x24] ss:$8 sps:$4 sm:$0xff]  }
 0x438   :  { %4553 = vmatprep.subr.mxu0 %v1013_v46  ;;  %4584 = vmatprep.subr.bf16.mxu1 %v5178_v38 }
 0x439   :  { %4554 = vmatpush3.msra.mxu0 %v1013_v46  ;;  %v1244_v46 = vrot.slane %v5570_v20, %v5685_v42 }
 0x43a   :  { %4555 = vmatprep.subr.mxu0 %v1012_v62 }
 0x43b   :  { %4556 = vmatpush3.msra.mxu0 %v1012_v62  ;;  %4585 = vmatpush3.bf16.msra.mxu1 %v5037_v49  ;;  %v5692_v62 = vld [vmem:[%s6379_s5 + $0x8] sm:$0xff] }
 0x43c   :  { %4557 = vmatprep.subr.mxu0 %v1011_v48  ;;  %4586 = vmatprep.subr.bf16.mxu1 %v5178_v38  ;;  %v1341_v2 = vrot.slane %v5692_v62, %v5271_v4 }
 0x43d   :  { %4558 = vmatpush3.msra.mxu0 %v1011_v48 }
 0x43e   :  { %4559 = vmatprep.subr.mxu0 %v1010_v30 }
 0x43f   :  { %4560 = vmatpush3.msra.mxu0 %v1010_v30  ;;  %4587 = vmatpush3.bf16.msra.mxu1 %v5038_v0 }
 0x440   :  { %4562 = vmatmul.mubr.msk.f32.vlgmr.msra.gmra.mxu0 %vm1016_vm4, %v5601_v31  ;;  %4564 = vmatprep.subr.bf16.mxu0 %v5178_v38 }
 0x441   :  { %4565 = vmatpush3.bf16.msra.mxu0 %v5031_v28  ;;  %4568 = vmatprep.mubr.msk.bf16.mxu0 %vm5179_vm2, %v5178_v38  ;;  %v5137_v28 = vld [vmem:[%s6374_s0] sm:$0xff] }
 0x442   :  { %4566 = vmatprep.subr.bf16.mxu0 %v5178_v38  ;;  %4588 = vmatprep.subr.bf16.mxu1 %v5178_v38 }
 0x443   :  { %4589 = vmatpush3.bf16.msra.mxu1 %v5039_v58 }
 0x444   :  { %4590 = vmatprep.subr.bf16.mxu1 %v5178_v38 }
 0x445   :  { %4567 = vmatpush3.bf16.msra.mxu0 %v5032_v26 }
 0x446   :  { %4572 = vmatprep.subr.bf16.mxu0 %v5178_v38 }
 0x500   :  { %v4563_v51 = vpop.f32.mrf.mxu0 }
 0x502   :  { %v1089_v3 = vpop.f32.mrf.mxu0 }
 0x503   :  { %v1102_v61 = vpack.c.bf16 %v4563_v51, %v1089_v3  ;;  %v5138_v51 = vld [vmem:[%s6374_s0 + $0x8] sm:$0xff] }
 0x505   :  { %4569 = vmatmul.mubr.msk.bf16.vlgmr.msra.gmra.mxu0 %vm223_vm1, %v1102_v61 }
 0x506   :  { %4573 = vmatpush3.bf16.msra.mxu0 %v5033_v53  ;;  %4576 = vmatprep.mubr.msk.bf16.mxu0 %vm5179_vm2, %v5178_v38  ;;  %v1347_v53 = vrot.slane %v5692_v62, %v5274_v5 }
 0x507   :  { %4574 = vmatprep.subr.bf16.mxu0 %v5178_v38 }
 0x50a   :  { %4575 = vmatpush3.bf16.msra.mxu0 %v5034_v56 }
 0x50d   :  { %4577 = vmatmul.mubr.msk.bf16.vlgmr.msra.gmra.mxu0 %vm223_vm1, %v5317_v23  ;;  %v5040_v23 = vld [vmem:[%s6387_s13 + $0x10] sm:$0xff]  }
 0x50e   :  { %4604 = vmatprep.mubr.msk.f32.mxu0 %vm85_vm0, %v5643_v57  ;;  %4591 = vmatpush3.bf16.msra.mxu1 %v5040_v23  ;;  %v5719_v23 = vld [vmem:[%s6376_s2 + $0x8] sm:$0xff] }
 0x50f   :  { %4592 = vmatprep.subr.bf16.mxu1 %v5178_v38 }
 0x512   :  { %4593 = vmatpush3.bf16.msra.mxu1 %v5041_v59  ;;  %v5726_v59 = vld [vmem:[%s6376_s2 + $0x10] sm:$0xff] }
 0x513   :  { %4594 = vmatprep.subr.bf16.mxu1 %v5178_v38 }
 0x516   :  { %4595 = vmatpush3.bf16.msra.mxu1 %v5042_v60  ;;  %v5740_v60 = vld [vmem:[%s6376_s2 + $0x20] sm:$0xff] }
 0x517   :  { %1486 = vmatprep.subr.bf16.mxu1 %v5045_v36 }
 0x5c5   :  { %v1156_v8 = vpop.f32.mrf.mxu0 }
 0x5c7   :  { %v4570_v9 = vpop.f32.mrf.mxu0 }
 0x5c9   :  { %v1159_v63 = vpop.f32.mrf.mxu0 }
 0x5cb   :  { %v4571_v13 = vpop.f32.mrf.mxu0 }
 0x5cd   :  { %v1209_v12 = vpop.f32.mrf.mxu0 }
 0x5ce   :  { %v1210_v17 = vadd.f32 %v1209_v12, %v1156_v8  ;;  %v5747_v8 = vld [vmem:[%s6376_s2 + $0x28] sm:$0xff] }
 0x5cf   :  { %v4578_v19 = vpop.f32.mrf.mxu0 }
 0x5d0   :  { %v1220_v14 = vadd.f32 %v1219_v18, %v1210_v17  ;;  %v5049_v17 = vld [vmem:[%s6380_s6 + $0x38] sm:$0xff]   ;;  %v5050_v19 = vld [vmem:[%s6380_s6 + $0x30] sm:$0xff]  }
 0x5d1   :  { %v1212_v7 = vpop.f32.mrf.mxu0 }
 0x5d2   :  { %v1213_v21 = vadd.f32 %v1212_v7, %v1159_v63  ;;  %v1222_v33 = vmax.f32 %v1220_v14, 0.0  ;;  %v5051_v7 = vld [vmem:[%s6380_s6 + $0x28] sm:$0xff]   ;;  %v5061_v14 = vld [vmem:[%s6383_s9 + $0x78] sm:$0xff]  }
 0x5d3   :  { %v4579_v22 = vpop.f32.mrf.mxu0 }
 0x5d4   :  { %v1221_v32 = vadd.f32 %v1219_v18, %v1213_v21  ;;  %v5053_v18 = vld [vmem:[%s6381_s7 + $0x78] sm:$0xff]   ;;  %v5062_v21 = vld [vmem:[%s6383_s9 + $0x70] sm:$0xff]   ;;  %v5063_v22 = vld [vmem:[%s6383_s9 + $0x68] sm:$0xff]  }
 0x5d6   :  { %v1223_v34 = vmax.f32 %v1221_v32, 0.0  ;;  %v5064_v32 = vld [vmem:[%s6383_s9 + $0x60] sm:$0xff]  }
 0x5d8   :  { %v1224_v35 = vpack.c.bf16 %v1223_v34, %v1222_v33 }
 0x5da   :  { %4597 = vmatmul.mubr.bf16.vlgmr.msra.gmra.mxu1 %v1224_v35 }
 0x5db   :  { %1506 = vmatprep.mubr.bf16.mxu1 %v5177_v24  ;;  %1487 = vmatpush1.bf16.msra.mxu1 %v5043_v39 }
 0x5dc   :  { %1488 = vmatprep.subr.bf16.mxu1 %v5048_v41 }
 0x5df   :  { %1489 = vmatpush1.bf16.msra.mxu1 %v5046_v40 }
 0x69a   :  { %v1327_v47 = vpop.f32.mrf.mxu1 }
 0x69b   :  { %v1328_v48 = vadd.f32 %v1327_v47, %v1244_v46 }
 0x69c   :  { %v4598_v30 = vpop.f32.mrf.mxu1 }
 0x69d   :  { %v5697_v26 = vadd.f32 %v5137_v28, %v1328_v48 }
 0x69e   :  { %v1330_v27 = vpop.f32.mrf.mxu1 }
 0x69f   :  { %v1331_v29 = vadd.f32 %v1330_v27, %v1244_v46  ;;  %v1342_v49 = vmul.f32 %v1341_v2, %v5697_v26 }
 0x6a0   :  { %v4599_v20 = vpop.f32.mrf.mxu1 }
 0x6a1   :  { %v5705_v3 = vadd.f32 %v5138_v51, %v1331_v29  ;;  %v1348_v0 = vadd.f32 %v1347_v53, %v1342_v49 }
 0x6a3   :  { %v1343_v61 = vmul.f32 %v1341_v2, %v5705_v3  ;;  %v1719_v2 = vrot.slane %v5692_v62, %v5490_v6 }
 0x6a5   :  { %v1349_v56 = vadd.f32 %v1347_v53, %v1343_v61 }
 0x6a7   :  { %4600 = vmatprep.subr.mxu0 %v1349_v56  ;;  %v5710_v58 = vpack.c.bf16 %v1349_v56, %v1348_v0 }
 0x6a8   :  { %4601 = vmatpush3.msra.mxu0 %v1349_v56 }
 0x6a9   :  { %4602 = vmatprep.subr.mxu0 %v1348_v0  ;;  %3850 = vmatmul.mubr.msk.bf16.vlgmr.msra.gmra.mxu1 %vm223_vm1, %v5710_v58 }
 0x6aa   :  { %4603 = vmatpush3.msra.mxu0 %v1348_v0  ;;  %4630 = vmatprep.mubr.msk.f32.mxu1 %vm85_vm0, %v5326_v25  ;;  %v5733_v25 = vld [vmem:[%s6376_s2 + $0x18] sm:$0xff] }
 0x6ab   :  { %4605 = vmatmul.mubr.msk.f32.vlgmr.msra.gmra.mxu0 %vm85_vm0, %v5719_v23 }
 0x6ac   :  { %4607 = vmatprep.mubr.msk.f32.mxu0 %vm85_vm0, %v5726_v59 }
 0x6af   :  { %4608 = vmatmul.mubr.msk.f32.gmra.mxu0 %vm85_vm0, %v5733_v25 }
 0x6b0   :  { %4610 = vmatprep.mubr.msk.f32.mxu0 %vm85_vm0, %v5740_v60 }
 0x6b3   :  { %4611 = vmatmul.mubr.msk.f32.gmra.mxu0 %vm85_vm0, %v5747_v8 }
 0x6b4   :  { %4617 = vmatprep.mubr.msk.f32.mxu0 %vm85_vm0, %v5643_v57 }
 0x769   :  { %v1508_v9 = vpop.f32.mrf.mxu1 }
 0x76b   :  { %v1510_v63 = vpop.f32.mrf.mxu1  ;;  %v5855_v33 = vpop.f32.mrf.mxu0 }
 0x76d   :  { %v1512_v13 = vpop.f32.mrf.mxu1  ;;  %v5857_v34 = vpop.f32.mrf.mxu0 }
 0x76e   :  { %4613 = vmatprep.subr.mxu0 %v1512_v13 }
 0x76f   :  { %v1514_v12 = vpop.f32.mrf.mxu1  ;;  %4614 = vmatpush3.msra.mxu0 %v1512_v13  ;;  %v5859_v35 = vpop.f32.mrf.mxu0 }
 0x770   :  { %4615 = vmatprep.subr.mxu0 %v1508_v9  ;;  %4626 = vmatprep.subr.mxu1 %v1514_v12 }
 0x771   :  { %4616 = vmatpush3.msra.mxu0 %v1508_v9  ;;  %4627 = vmatpush3.msra.mxu1 %v1514_v12  ;;  %v5861_v36 = vpop.f32.mrf.mxu0 }
 0x772   :  { %4618 = vmatmul.mubr.msk.f32.vlgmr.msra.gmra.mxu0 %vm85_vm0, %v5719_v23  ;;  %4628 = vmatprep.subr.mxu1 %v1510_v63 }
 0x773   :  { %4639 = vmatprep.subr.bf16.mxu0 %v5178_v38  ;;  %4629 = vmatpush3.msra.mxu1 %v1510_v63  ;;  %v5863_v39 = vpop.f32.mrf.mxu0 }
 0x774   :  { %4640 = vmatpush3.bf16.msra.mxu0 %v5049_v17  ;;  %4620 = vmatprep.mubr.msk.f32.mxu0 %vm85_vm0, %v5726_v59 }
 0x775   :  { %4641 = vmatprep.subr.bf16.mxu0 %v5178_v38  ;;  %4631 = vmatmul.mubr.msk.f32.vlgmr.msra.gmra.mxu1 %vm85_vm0, %v5349_v37  ;;  %v5052_v37 = vld [vmem:[%s6380_s6 + $0x20] sm:$0xff]   ;;  %v5865_v40 = vpop.f32.mrf.mxu0 }
 0x776   :  { %4621 = vmatmul.mubr.msk.f32.gmra.mxu0 %vm85_vm0, %v5733_v25  ;;  %4659 = vmatprep.subr.bf16.mxu1 %v5178_v38 }
 0x777   :  { %4623 = vmatprep.mubr.msk.f32.mxu0 %vm85_vm0, %v5740_v60  ;;  %4660 = vmatpush3.bf16.msra.mxu1 %v5053_v18 }
 0x778   :  { %4642 = vmatpush3.bf16.msra.mxu0 %v5050_v19  ;;  %4661 = vmatprep.subr.bf16.mxu1 %v5178_v38 }
 0x779   :  { %4643 = vmatprep.subr.bf16.mxu0 %v5178_v38  ;;  %4633 = vmatprep.mubr.msk.f32.mxu1 %vm85_vm0, %v5423_v50  ;;  %v5054_v50 = vld [vmem:[%s6381_s7 + $0x70] sm:$0xff]  }
 0x77a   :  { %4624 = vmatmul.mubr.msk.f32.gmra.mxu0 %vm85_vm0, %v5747_v8  ;;  %4634 = vmatmul.mubr.msk.f32.gmra.mxu1 %vm85_vm0, %v5434_v52  ;;  %v5058_v52 = vld [vmem:[%s6381_s7 + $0x50] sm:$0xff]  }
 0x77b   :  { %4647 = vmatprep.mubr.msk.bf16.mxu0 %vm5179_vm2, %v5178_v38  ;;  %4636 = vmatprep.mubr.msk.f32.mxu1 %vm85_vm0, %v5445_v54  ;;  %v5059_v54 = vld [vmem:[%s6381_s7 + $0x48] sm:$0xff]  }
 0x77c   :  { %4644 = vmatpush3.bf16.msra.mxu0 %v5051_v7  ;;  %4662 = vmatpush3.bf16.msra.mxu1 %v5054_v50 }
 0x77d   :  { %4645 = vmatprep.subr.bf16.mxu0 %v5178_v38  ;;  %4663 = vmatprep.subr.bf16.mxu1 %v5178_v38 }
 0x77e   :  { %4637 = vmatmul.mubr.msk.f32.gmra.mxu1 %vm85_vm0, %v5452_v55  ;;  %v5060_v55 = vld [vmem:[%s6381_s7 + $0x40] sm:$0xff]  }
 0x77f   :  { %4675 = vmatprep.mubr.msk.bf16.mxu1 %vm5179_vm2, %v5178_v38 }
 0x780   :  { %4646 = vmatpush3.bf16.msra.mxu0 %v5052_v37 }
 0x781   :  { %4687 = vmatprep.subr.bf16.mxu0 %v5178_v38 }
 0x783   :  { %4648 = vmatmul.mubr.msk.bf16.vlgmr.msra.gmra.mxu0 %vm529_vm3, %v5380_v43  ;;  %v5055_v43 = vld [vmem:[%s6381_s7 + $0x68] sm:$0xff]  }
 0x784   :  { %4651 = vmatprep.mubr.msk.bf16.mxu0 %vm5179_vm2, %v5178_v38  ;;  %4664 = vmatpush3.bf16.msra.mxu1 %v5055_v43 }
 0x785   :  { %4665 = vmatprep.subr.bf16.mxu1 %v5178_v38  ;;  %4688 = vmatpush3.bf16.msra.mxu0 %v5061_v14 }
 0x786   :  { %4689 = vmatprep.subr.bf16.mxu0 %v5178_v38 }
 0x789   :  { %4690 = vmatpush3.bf16.msra.mxu0 %v5062_v21 }
 0x78a   :  { %4691 = vmatprep.subr.bf16.mxu0 %v5178_v38 }
 0x78b   :  { %4652 = vmatmul.mubr.msk.bf16.gmra.mxu0 %vm529_vm3, %v5390_v44  ;;  %v5056_v44 = vld [vmem:[%s6381_s7 + $0x60] sm:$0xff]  }
 0x78c   :  { %4655 = vmatprep.mubr.msk.bf16.mxu0 %vm5179_vm2, %v5178_v38  ;;  %4666 = vmatpush3.bf16.msra.mxu1 %v5056_v44 }
 0x78d   :  { %4667 = vmatprep.subr.bf16.mxu1 %v5178_v38  ;;  %4692 = vmatpush3.bf16.msra.mxu0 %v5063_v22  ;;  %v5065_v22 = vld [vmem:[%s6383_s9 + $0x58] sm:$0xff]  }
 0x78e   :  { %4693 = vmatprep.subr.bf16.mxu0 %v5178_v38 }
 0x791   :  { %4694 = vmatpush3.bf16.msra.mxu0 %v5064_v32  ;;  %v5066_v32 = vld [vmem:[%s6383_s9 + $0x50] sm:$0xff]  }
 0x792   :  { %4695 = vmatprep.subr.bf16.mxu0 %v5178_v38 }
 0x793   :  { %4656 = vmatmul.mubr.msk.bf16.gmra.mxu0 %vm529_vm3, %v5399_v45  ;;  %v5057_v45 = vld [vmem:[%s6381_s7 + $0x58] sm:$0xff]  }
 0x794   :  { %4703 = vmatprep.mubr.msk.bf16.mxu0 %vm5179_vm2, %v5178_v38  ;;  %4668 = vmatpush3.bf16.msra.mxu1 %v5057_v45 }
 0x795   :  { %4669 = vmatprep.subr.bf16.mxu1 %v5178_v38  ;;  %4696 = vmatpush3.bf16.msra.mxu0 %v5065_v22 }
 0x796   :  { %4697 = vmatprep.subr.bf16.mxu0 %v5178_v38 }
 0x798   :  { %4670 = vmatpush3.bf16.msra.mxu1 %v5058_v52 }
 0x799   :  { %4671 = vmatprep.subr.bf16.mxu1 %v5178_v38  ;;  %4698 = vmatpush3.bf16.msra.mxu0 %v5066_v32 }
 0x79a   :  { %4699 = vmatprep.subr.bf16.mxu0 %v5178_v38 }
 0x79c   :  { %4672 = vmatpush3.bf16.msra.mxu1 %v5059_v54 }
 0x79d   :  { %4673 = vmatprep.subr.bf16.mxu1 %v5178_v38 }
 0x7a0   :  { %4674 = vmatpush3.bf16.msra.mxu1 %v5060_v55 }
 0x7a1   :  { %4715 = vmatprep.subr.bf16.mxu1 %v5178_v38 }
 0x832   :  { %v5867_v41 = vpop.f32.mrf.mxu0 }
 0x834   :  { %v5869_v46 = vpop.f32.mrf.mxu0 }
 0x836   :  { %v5871_v47 = vpop.f32.mrf.mxu0 }
 0x838   :  { %v5873_v48 = vpop.f32.mrf.mxu0 }
 0x83a   :  { %v5875_v30 = vpop.f32.mrf.mxu0 }
 0x83c   :  { %v5877_v28 = vpop.f32.mrf.mxu0 }
 0x843   :  { %v1778_v27 = vpop.f32.mrf.mxu0 }
 0x844   :  { %v1779_v20 = vadd.f32 %v1778_v27, %v1719_v2  ;;  %v5068_v27 = vld [vmem:[%s6383_s9 + $0x40] sm:$0xff]  }
 0x845   :  { %v4649_v29 = vpop.f32.mrf.mxu0 }
 0x846   :  { %v1801_v61 = vmax.f32 %v1779_v20, 0.0  ;;  %v5069_v29 = vld [vmem:[%s6384_s10 + $0x78] sm:$0xff]   ;;  %v5070_v20 = vld [vmem:[%s6384_s10 + $0x70] sm:$0xff]  }
 0x847   :  { %v1781_v49 = vpop.f32.mrf.mxu0 }
 0x848   :  { %v1782_v51 = vadd.f32 %v1781_v49, %v1719_v2  ;;  %v5071_v49 = vld [vmem:[%s6384_s10 + $0x68] sm:$0xff]  }
 0x849   :  { %v4650_v53 = vpop.f32.mrf.mxu0 }
 0x84a   :  { %v1802_v56 = vmax.f32 %v1782_v51, 0.0  ;;  %v5072_v51 = vld [vmem:[%s6384_s10 + $0x60] sm:$0xff]   ;;  %v5073_v53 = vld [vmem:[%s6384_s10 + $0x58] sm:$0xff]  }
 0x84b   :  { %v1786_v0 = vpop.f32.mrf.mxu0 }
 0x84c   :  { %v1807_v9 = vpack.c.bf16 %v1802_v56, %v1801_v61  ;;  %v1787_v13 = vadd.f32 %v1786_v0, %v1719_v2  ;;  %v4632_v61 = vpop.f32.mrf.mxu1 }
 0x84d   :  { %v4653_v63 = vpop.f32.mrf.mxu0 }
 0x84e   :  { %4676 = vmatmul.mubr.bf16.vlgmr.msra.gmra.mxu1 %v1807_v9  ;;  %v1803_v19 = vmax.f32 %v1787_v13, 0.0  ;;  %v1678_v56 = vpop.f32.mrf.mxu1 }
 0x84f   :  { %v1789_v12 = vpop.f32.mrf.mxu0  ;;  %4679 = vmatprep.mubr.msk.bf16.mxu1 %vm5179_vm2, %v5178_v38  ;;  %4716 = vmatpush3.bf16.msra.mxu1 %v5069_v29 }
 0x850   :  { %v1790_v17 = vadd.f32 %v1789_v12, %v1719_v2  ;;  %4717 = vmatprep.subr.bf16.mxu1 %v5178_v38  ;;  %v4635_v0 = vpop.f32.mrf.mxu1 }
 0x851   :  { %v4654_v18 = vpop.f32.mrf.mxu0 }
 0x852   :  { %v1804_v7 = vmax.f32 %v1790_v17, 0.0  ;;  %v1688_v9 = vpop.f32.mrf.mxu1 }
 0x853   :  { %v1794_v37 = vpop.f32.mrf.mxu0  ;;  %4718 = vmatpush3.bf16.msra.mxu1 %v5070_v20 }
 0x854   :  { %v1808_v50 = vpack.c.bf16 %v1804_v7, %v1803_v19  ;;  %v1795_v44 = vadd.f32 %v1794_v37, %v1719_v2  ;;  %4719 = vmatprep.subr.bf16.mxu1 %v5178_v38  ;;  %v4638_v63 = vpop.f32.mrf.mxu1  ;;  %v1941_v7 = vrot.slane %v5692_v62, %v5538_v16 }
 0x855   :  { %v4657_v43 = vpop.f32.mrf.mxu0 }
 0x856   :  { %4680 = vmatmul.mubr.bf16.gmra.mxu1 %v1808_v50  ;;  %v1805_v55 = vmax.f32 %v1795_v44, 0.0  ;;  %v1698_v13 = vpop.f32.mrf.mxu1 }
 0x857   :  { %v1797_v45 = vpop.f32.mrf.mxu0  ;;  %4683 = vmatprep.mubr.msk.bf16.mxu1 %vm5179_vm2, %v5178_v38  ;;  %4720 = vmatpush3.bf16.msra.mxu1 %v5071_v49 }
 0x858   :  { %v1798_v52 = vadd.f32 %v1797_v45, %v1719_v2  ;;  %v5067_v2 = vld [vmem:[%s6383_s9 + $0x48] sm:$0xff]   ;;  %4721 = vmatprep.subr.bf16.mxu1 %v5178_v38 }
 0x859   :  { %v4658_v54 = vpop.f32.mrf.mxu0  ;;  %4700 = vmatpush3.bf16.msra.mxu0 %v5067_v2 }
 0x85a   :  { %v1806_v14 = vmax.f32 %v1798_v52, 0.0  ;;  %4701 = vmatprep.subr.bf16.mxu0 %v5178_v38 }
 0x85b   :  { %4722 = vmatpush3.bf16.msra.mxu1 %v5072_v51 }
 0x85c   :  { %v1809_v21 = vpack.c.bf16 %v1806_v14, %v1805_v55  ;;  %4723 = vmatprep.subr.bf16.mxu1 %v5178_v38 }
 0x85d   :  { %4702 = vmatpush3.bf16.msra.mxu0 %v5068_v27 }
 0x85e   :  { %4684 = vmatmul.mubr.bf16.gmra.mxu1 %v1809_v21 }
 0x85f   :  { %4731 = vmatprep.mubr.msk.bf16.mxu1 %vm5179_vm2, %v5178_v38  ;;  %4724 = vmatpush3.bf16.msra.mxu1 %v5073_v53 }
 0x860   :  { %4725 = vmatprep.subr.bf16.mxu1 %v5178_v38 }
 0x90e   :  { %v1909_v12 = vpop.f32.mrf.mxu1 }
 0x90f   :  { %v1910_v17 = vadd.f32 %v1909_v12, %v5869_v46 }
 0x910   :  { %v4677_v18 = vpop.f32.mrf.mxu1 }
 0x911   :  { %v1932_v19 = vadd.f32 %v1910_v17, %v1678_v56 }
 0x912   :  { %v1912_v37 = vpop.f32.mrf.mxu1 }
 0x913   :  { %v1913_v50 = vadd.f32 %v5867_v41, %v1912_v37  ;;  %v1942_v44 = vadd.f32 %v1941_v7, %v1932_v19 }
 0x914   :  { %v4678_v43 = vpop.f32.mrf.mxu1 }
 0x915   :  { %v1933_v45 = vadd.f32 %v4632_v61, %v1913_v50  ;;  %v1948_v21 = vmax.f32 %v1942_v44, 0.0 }
 0x916   :  { %v1917_v52 = vpop.f32.mrf.mxu1 }
 0x917   :  { %v1943_v54 = vadd.f32 %v1941_v7, %v1933_v45  ;;  %v1918_v55 = vadd.f32 %v1917_v52, %v5873_v48 }
 0x918   :  { %v4681_v14 = vpop.f32.mrf.mxu1 }
 0x919   :  { %v1949_v22 = vmax.f32 %v1943_v54, 0.0  ;;  %v1934_v32 = vadd.f32 %v1918_v55, %v1688_v9 }
 0x91a   :  { %v1920_v46 = vpop.f32.mrf.mxu1 }
 0x91b   :  { %v1954_v2 = vpack.c.bf16 %v1949_v22, %v1948_v21  ;;  %v1921_v27 = vadd.f32 %v5871_v47, %v1920_v46  ;;  %v1944_v20 = vadd.f32 %v1941_v7, %v1934_v32 }
 0x91c   :  { %v4682_v29 = vpop.f32.mrf.mxu1 }
 0x91d   :  { %v1935_v49 = vadd.f32 %v4635_v0, %v1921_v27  ;;  %4704 = vmatmul.mubr.bf16.vlgmr.msra.gmra.mxu0 %v1954_v2  ;;  %v1950_v61 = vmax.f32 %v1944_v20, 0.0 }
 0x91e   :  { %v1925_v41 = vpop.f32.mrf.mxu1  ;;  %4707 = vmatprep.mubr.msk.bf16.mxu0 %vm5179_vm2, %v5178_v38 }
 0x91f   :  { %v1945_v51 = vadd.f32 %v1941_v7, %v1935_v49  ;;  %v1926_v53 = vadd.f32 %v1925_v41, %v5877_v28  ;;  %v5075_v28 = vld [vmem:[%s6384_s10 + $0x48] sm:$0xff]  }
 0x920   :  { %v4685_v48 = vpop.f32.mrf.mxu1 }
 0x921   :  { %v1951_v56 = vmax.f32 %v1945_v51, 0.0  ;;  %v1936_v12 = vadd.f32 %v1926_v53, %v1698_v13 }
 0x922   :  { %v1928_v9 = vpop.f32.mrf.mxu1 }
 0x923   :  { %v1929_v17 = vadd.f32 %v5875_v30, %v1928_v9  ;;  %v1955_v18 = vpack.c.bf16 %v1951_v56, %v1950_v61  ;;  %v1946_v19 = vadd.f32 %v1941_v7, %v1936_v12  ;;  %v5074_v30 = vld [vmem:[%s6384_s10 + $0x50] sm:$0xff]  }
 0x924   :  { %v4686_v47 = vpop.f32.mrf.mxu1  ;;  %4726 = vmatpush3.bf16.msra.mxu1 %v5074_v30 }
 0x925   :  { %v1937_v37 = vadd.f32 %v4638_v63, %v1929_v17  ;;  %4708 = vmatmul.mubr.bf16.gmra.mxu0 %v1955_v18  ;;  %v1952_v50 = vmax.f32 %v1946_v19, 0.0  ;;  %4727 = vmatprep.subr.bf16.mxu1 %v5178_v38  ;;  %v5076_v63 = vld [vmem:[%s6384_s10 + $0x40] sm:$0xff]  }
 0x926   :  { %4711 = vmatprep.mubr.msk.bf16.mxu0 %vm5179_vm2, %v5178_v38 }
 0x927   :  { %v1947_v0 = vadd.f32 %v1941_v7, %v1937_v37 }
 0x928   :  { %4728 = vmatpush3.bf16.msra.mxu1 %v5075_v28 }
 0x929   :  { %v1953_v43 = vmax.f32 %v1947_v0, 0.0  ;;  %4729 = vmatprep.subr.bf16.mxu1 %v5178_v38 }
 0x92b   :  { %v1956_v44 = vpack.c.bf16 %v1953_v43, %v1952_v50 }
 0x92c   :  { %4730 = vmatpush3.bf16.msra.mxu1 %v5076_v63 }
 0x92d   :  { %4712 = vmatmul.mubr.bf16.gmra.mxu0 %v1956_v44  ;;  %4774 = vmatprep.subr.bf16.mxu1 %v5178_v38 }
 0x92e   :  { %4755 = vmatprep.mubr.msk.f32.mxu0 %vm1016_vm4, %v5583_v10  ;;  %v1977_v10 = vrot.slane %v5692_v62, %v5565_v15 }
 0x9dd   :  { %v2060_v13 = vpop.f32.mrf.mxu0 }
 0x9de   :  { %v2061_v45 = vadd.f32 %v2060_v13, %v1977_v10 }
 0x9df   :  { %v4705_v7 = vpop.f32.mrf.mxu0 }
 0x9e0   :  { %v2083_v14 = vmax.f32 %v2061_v45, 0.0 }
 0x9e1   :  { %v2063_v52 = vpop.f32.mrf.mxu0 }
 0x9e2   :  { %v2064_v54 = vadd.f32 %v2063_v52, %v1977_v10 }
 0x9e3   :  { %v4706_v55 = vpop.f32.mrf.mxu0 }
 0x9e4   :  { %v2084_v21 = vmax.f32 %v2064_v54, 0.0 }
 0x9e5   :  { %v2068_v22 = vpop.f32.mrf.mxu0 }
 0x9e6   :  { %v2089_v32 = vpack.c.bf16 %v2084_v21, %v2083_v14  ;;  %v2069_v2 = vadd.f32 %v2068_v22, %v1977_v10 }
 0x9e7   :  { %v4709_v46 = vpop.f32.mrf.mxu0 }
 0x9e8   :  { %4732 = vmatmul.mubr.bf16.vlgmr.msra.gmra.mxu1 %v2089_v32  ;;  %v2085_v49 = vmax.f32 %v2069_v2, 0.0 }
 0x9e9   :  { %v2071_v27 = vpop.f32.mrf.mxu0  ;;  %4735 = vmatprep.mubr.msk.bf16.mxu1 %vm5179_vm2, %v5178_v38 }
 0x9ea   :  { %v2072_v29 = vadd.f32 %v2071_v27, %v1977_v10 }
 0x9eb   :  { %v4710_v20 = vpop.f32.mrf.mxu0 }
 0x9ec   :  { %v2086_v41 = vmax.f32 %v2072_v29, 0.0 }
 0x9ed   :  { %v2076_v51 = vpop.f32.mrf.mxu0 }
 0x9ee   :  { %v2090_v53 = vpack.c.bf16 %v2086_v41, %v2085_v49  ;;  %v2077_v61 = vadd.f32 %v2076_v51, %v1977_v10  ;;  %v5079_v49 = vld [vmem:[%s6385_s11 + $0x18] sm:$0xff]   ;;  %v5080_v51 = vld [vmem:[%s6385_s11 + $0x10] sm:$0xff]  }
 0x9ef   :  { %v4713_v48 = vpop.f32.mrf.mxu0 }
 0x9f0   :  { %4736 = vmatmul.mubr.bf16.gmra.mxu1 %v2090_v53  ;;  %v2087_v17 = vmax.f32 %v2077_v61, 0.0  ;;  %v5084_v53 = vld [vmem:[%s6387_s13 + $0x60] sm:$0xff]   ;;  %v5085_v48 = vld [vmem:[%s6387_s13 + $0x58] sm:$0xff]   ;;  %v5087_v61 = vld [vmem:[%s6387_s13 + $0x48] sm:$0xff]  }
 0x9f1   :  { %v2079_v56 = vpop.f32.mrf.mxu0  ;;  %4739 = vmatprep.mubr.msk.bf16.mxu1 %vm5179_vm2, %v5178_v38 }
 0x9f2   :  { %v2080_v12 = vadd.f32 %v2079_v56, %v1977_v10  ;;  %v2112_v10 = vrot.slane %v5692_v62, %v5588_v1  ;;  %v5088_v56 = vld [vmem:[%s6387_s13 + $0x40] sm:$0xff]  }
 0x9f3   :  { %v4714_v9 = vpop.f32.mrf.mxu0 }
 0x9f4   :  { %v2088_v18 = vmax.f32 %v2080_v12, 0.0 }
 0x9f6   :  { %v2091_v47 = vpack.c.bf16 %v2088_v18, %v2087_v17 }
 0x9f8   :  { %4740 = vmatmul.mubr.bf16.gmra.mxu1 %v2091_v47 }
 0x9f9   :  { %4790 = vmatprep.mubr.msk.bf16.mxu1 %vm5179_vm2, %v5178_v38 }
 0xaa8   :  { %v2195_v19 = vpop.f32.mrf.mxu1 }
 0xaa9   :  { %v2196_v2 = vadd.f32 %v2195_v19, %v2112_v10 }
 0xaaa   :  { %v4733_v37 = vpop.f32.mrf.mxu1 }
 0xaab   :  { %v2422_v37 = vrot.slane %v5692_v62, %v5667_v11 }
 0xaac   :  { %v2198_v0 = vpop.f32.mrf.mxu1 }
 0xaad   :  { %v2199_v32 = vadd.f32 %v2198_v0, %v2112_v10 }
 0xaae   :  { %v4734_v50 = vpop.f32.mrf.mxu1 }
 0xaaf   :  { %v2219_v29 = vmul.f32 %v5855_v33, %v2199_v32  ;;  %v5078_v33 = vld [vmem:[%s6386_s12 + $0x10] sm:$0xff]  }
 0xab0   :  { %v2203_v43 = vpop.f32.mrf.mxu1 }
 0xab1   :  { %v2204_v21 = vadd.f32 %v2203_v43, %v2112_v10 }
 0xab2   :  { %v4737_v44 = vpop.f32.mrf.mxu1 }
 0xab3   :  { %v2220_v27 = vmul.f32 %v2204_v21, %v5861_v36 }
 0xab4   :  { %v2206_v30 = vpop.f32.mrf.mxu1 }
 0xab5   :  { %v2207_v55 = vadd.f32 %v2206_v30, %v2112_v10 }
 0xab6   :  { %v4738_v28 = vpop.f32.mrf.mxu1 }
 0xab7   :  { %v2221_v46 = vmul.f32 %v5859_v35, %v2207_v55  ;;  %v5083_v35 = vld [vmem:[%s6387_s13 + $0x68] sm:$0xff]  }
 0xab8   :  { %v2211_v63 = vpop.f32.mrf.mxu1 }
 0xab9   :  { %v2212_v45 = vadd.f32 %v2211_v63, %v2112_v10 }
 0xaba   :  { %v4741_v13 = vpop.f32.mrf.mxu1 }
 0xabb   :  { %v2222_v22 = vmul.f32 %v2212_v45, %v5865_v40  ;;  %v5077_v40 = vld [vmem:[%s6386_s12 + $0x18] sm:$0xff]  }
 0xabc   :  { %v2214_v7 = vpop.f32.mrf.mxu1 }
 0xabd   :  { %v2215_v52 = vadd.f32 %v2214_v7, %v2112_v10  ;;  %v2448_v7 = vrot.slane %v5692_v62, %v5685_v42 }
 0xabe   :  { %v4742_v54 = vpop.f32.mrf.mxu1 }
 0xabf   :  { %v2223_v14 = vmul.f32 %v5863_v39, %v2215_v52  ;;  %v2218_v39 = vmul.f32 %v2196_v2, %v5857_v34  ;;  %v5081_v34 = vld [vmem:[%s6387_s13 + $0x78] sm:$0xff]   ;;  %v6031_v54 = vld [vmem:[%s6379_s5 + $0x10] sm:$0xff] }
 0xac0   :  { %4775 = vmatpush3.bf16.msra.mxu1 %v5081_v34 }
 0xac1   :  { %4743 = vmatprep.subr.mxu0 %v2223_v14  ;;  %4776 = vmatprep.subr.bf16.mxu1 %v5178_v38 }
 0xac2   :  { %4744 = vmatpush3.msra.mxu0 %v2223_v14 }
 0xac3   :  { %4745 = vmatprep.subr.mxu0 %v2222_v22 }
 0xac4   :  { %4746 = vmatpush3.msra.mxu0 %v2222_v22  ;;  %v2545_v22 = vrot.slane %v6031_v54, %v5271_v4  ;;  %v5089_v4 = vld [vmem:[%s6382_s8 + $0x50] ss:$8 sps:$4 sm:$0xff]  }
 0xac5   :  { %4747 = vmatprep.subr.mxu0 %v2221_v46 }
 0xac6   :  { %4748 = vmatpush3.msra.mxu0 %v2221_v46 }
 0xac7   :  { %4749 = vmatprep.subr.mxu0 %v2220_v27 }
 0xac8   :  { %4750 = vmatpush3.msra.mxu0 %v2220_v27  ;;  %v2551_v27 = vrot.slane %v6031_v54, %v5274_v5  ;;  %v5092_v5 = vld [vmem:[%s6382_s8 + $0x40] ss:$8 sps:$4 sm:$0xff]  }
 0xac9   :  { %4751 = vmatprep.subr.mxu0 %v2219_v29 }
 0xaca   :  { %4752 = vmatpush3.msra.mxu0 %v2219_v29 }
 0xacb   :  { %4753 = vmatprep.subr.mxu0 %v2218_v39 }
 0xacc   :  { %4754 = vmatpush3.msra.mxu0 %v2218_v39 }
 0xacd   :  { %4756 = vmatmul.mubr.msk.f32.vlgmr.msra.gmra.mxu0 %vm1016_vm4, %v5601_v31  ;;  %4758 = vmatprep.subr.bf16.mxu0 %v5178_v38  ;;  %v5082_v31 = vld [vmem:[%s6387_s13 + $0x70] sm:$0xff]  }
 0xace   :  { %4759 = vmatpush3.bf16.msra.mxu0 %v5077_v40  ;;  %4762 = vmatprep.mubr.msk.bf16.mxu0 %vm5179_vm2, %v5178_v38 }
 0xacf   :  { %4760 = vmatprep.subr.bf16.mxu0 %v5178_v38  ;;  %4777 = vmatpush3.bf16.msra.mxu1 %v5082_v31 }
 0xad0   :  { %4778 = vmatprep.subr.bf16.mxu1 %v5178_v38 }
 0xad2   :  { %4761 = vmatpush3.bf16.msra.mxu0 %v5078_v33  ;;  %v5144_v33 = vld [vmem:[%s6377_s3] sm:$0xff] }
 0xad3   :  { %4766 = vmatprep.subr.bf16.mxu0 %v5178_v38  ;;  %4779 = vmatpush3.bf16.msra.mxu1 %v5083_v35 }
 0xad4   :  { %4780 = vmatprep.subr.bf16.mxu1 %v5178_v38 }
 0xad7   :  { %4781 = vmatpush3.bf16.msra.mxu1 %v5084_v53 }
 0xad8   :  { %4782 = vmatprep.subr.bf16.mxu1 %v5178_v38 }
 0xadb   :  { %4783 = vmatpush3.bf16.msra.mxu1 %v5085_v48  ;;  %v5095_v48 = vld [vmem:[%s6380_s6 + $0x58] sm:$0xff]  }
 0xadc   :  { %4784 = vmatprep.subr.bf16.mxu1 %v5178_v38 }
 0xb8d   :  { %v4757_v36 = vpop.f32.mrf.mxu0 }
 0xb8f   :  { %v2290_v20 = vpop.f32.mrf.mxu0 }
 0xb90   :  { %v2304_v41 = vpack.c.bf16 %v4757_v36, %v2290_v20 }
 0xb92   :  { %4763 = vmatmul.mubr.msk.bf16.vlgmr.msra.gmra.mxu0 %vm223_vm1, %v2304_v41 }
 0xb93   :  { %4767 = vmatpush3.bf16.msra.mxu0 %v5079_v49  ;;  %4770 = vmatprep.mubr.msk.bf16.mxu0 %vm5179_vm2, %v5178_v38 }
 0xb94   :  { %4768 = vmatprep.subr.bf16.mxu0 %v5178_v38 }
 0xb97   :  { %4769 = vmatpush3.bf16.msra.mxu0 %v5080_v51 }
 0xb9a   :  { %4771 = vmatmul.mubr.msk.bf16.vlgmr.msra.gmra.mxu0 %vm223_vm1, %v5710_v58  ;;  %v5086_v58 = vld [vmem:[%s6387_s13 + $0x50] sm:$0xff]  }
 0xb9b   :  { %4798 = vmatprep.mubr.msk.f32.mxu0 %vm85_vm0, %v5643_v57  ;;  %4785 = vmatpush3.bf16.msra.mxu1 %v5086_v58  ;;  %v5099_v58 = vld [vmem:[%s6381_s7 + $0xb8] sm:$0xff]  }
 0xb9c   :  { %4786 = vmatprep.subr.bf16.mxu1 %v5178_v38 }
 0xb9f   :  { %4787 = vmatpush3.bf16.msra.mxu1 %v5087_v61  ;;  %v5096_v61 = vld [vmem:[%s6380_s6 + $0x50] sm:$0xff]  }
 0xba0   :  { %4788 = vmatprep.subr.bf16.mxu1 %v5178_v38 }
 0xba3   :  { %4789 = vmatpush3.bf16.msra.mxu1 %v5088_v56  ;;  %v5146_v56 = vld [vmem:[%s6377_s3 + $0x10] sm:$0xff] }
 0xc52   :  { %v2359_v12 = vpop.f32.mrf.mxu0 }
 0xc54   :  { %v4764_v9 = vpop.f32.mrf.mxu0 }
 0xc55   :  { %v5150_v9 = vld [vmem:[%s6375_s1] sm:$0xff]  }
 0xc56   :  { %v2362_v17 = vpop.f32.mrf.mxu0 }
 0xc58   :  { %v4765_v18 = vpop.f32.mrf.mxu0 }
 0xc59   :  { %v5152_v18 = vld [vmem:[%s6375_s1 + $0x10] sm:$0xff]  }
 0xc5a   :  { %v2412_v47 = vpop.f32.mrf.mxu0 }
 0xc5b   :  { %v2413_v19 = vadd.f32 %v2412_v47, %v2359_v12  ;;  %v5149_v12 = vld [vmem:[%s6377_s3 + $0x28] sm:$0xff]  ;;  %v5100_v47 = vld [vmem:[%s6381_s7 + $0xb0] sm:$0xff]  }
 0xc5c   :  { %v4772_v0 = vpop.f32.mrf.mxu0 }
 0xc5d   :  { %v2423_v43 = vadd.f32 %v2422_v37, %v2413_v19  ;;  %v5101_v19 = vld [vmem:[%s6381_s7 + $0xa8] sm:$0xff]   ;;  %v5103_v0 = vld [vmem:[%s6381_s7 + $0x98] sm:$0xff]  }
 0xc5e   :  { %v2415_v50 = vpop.f32.mrf.mxu0 }
 0xc5f   :  { %v2416_v44 = vadd.f32 %v2415_v50, %v2362_v17  ;;  %v2425_v63 = vmax.f32 %v2423_v43, 0.0  ;;  %v5151_v17 = vld [vmem:[%s6375_s1 + $0x8] sm:$0xff]   ;;  %v5104_v50 = vld [vmem:[%s6381_s7 + $0x90] sm:$0xff]  }
 0xc60   :  { %v4773_v30 = vpop.f32.mrf.mxu0  ;;  %v5105_v43 = vld [vmem:[%s6381_s7 + $0x88] sm:$0xff]  }
 0xc61   :  { %v2424_v28 = vadd.f32 %v2422_v37, %v2416_v44  ;;  %v5102_v37 = vld [vmem:[%s6381_s7 + $0xa0] sm:$0xff]   ;;  %v5107_v30 = vld [vmem:[%s6383_s9 + $0xb8] sm:$0xff]  }
 0xc62   :  { %v5106_v44 = vld [vmem:[%s6381_s7 + $0x80] sm:$0xff]  }
 0xc63   :  { %v2426_v13 = vmax.f32 %v2424_v28, 0.0  ;;  %v5108_v28 = vld [vmem:[%s6383_s9 + $0xb0] sm:$0xff]  }
 0xc65   :  { %v2427_v10 = vpack.c.bf16 %v2426_v13, %v2425_v63  ;;  %v5109_v63 = vld [vmem:[%s6383_s9 + $0xa8] sm:$0xff]   ;;  %v5110_v13 = vld [vmem:[%s6383_s9 + $0xa0] sm:$0xff]  }
 0xc67   :  { %4791 = vmatmul.mubr.bf16.vlgmr.msra.gmra.mxu1 %v2427_v10 }
 0xc68   :  { %4811 = vmatprep.mubr.msk.f32.mxu1 %vm85_vm0, %v5643_v57 }
 0xd27   :  { %v2531_v45 = vpop.f32.mrf.mxu1 }
 0xd28   :  { %v2532_v52 = vadd.f32 %v2531_v45, %v2448_v7 }
 0xd29   :  { %v4792_v55 = vpop.f32.mrf.mxu1 }
 0xd2a   :  { %v6034_v21 = vadd.f32 %v2532_v52, %v5697_v26  ;;  %v5091_v26 = vld [vmem:[%s6382_s8 + $0x54] ss:$8 sps:$4 sm:$0xff]  }
 0xd2b   :  { %v2534_v14 = vpop.f32.mrf.mxu1 }
 0xd2c   :  { %v2535_v32 = vadd.f32 %v2534_v14, %v2448_v7  ;;  %v2546_v62 = vmul.f32 %v2545_v22, %v6034_v21 }
 0xd2d   :  { %v4793_v57 = vpop.f32.mrf.mxu1 }
 0xd2e   :  { %v6039_v46 = vadd.f32 %v2535_v32, %v5705_v3  ;;  %v2552_v39 = vadd.f32 %v2551_v27, %v2546_v62  ;;  %v5094_v3 = vld [vmem:[%s6382_s8 + $0x44] ss:$8 sps:$4 sm:$0xff]  }
 0xd30   :  { %v2547_v2 = vmul.f32 %v2545_v22, %v6039_v46  ;;  %v2923_v22 = vrot.slane %v6031_v54, %v5490_v6 }
 0xd32   :  { %v2553_v29 = vadd.f32 %v2551_v27, %v2547_v2 }
 0xd34   :  { %4794 = vmatprep.subr.mxu0 %v2553_v29  ;;  %v6068_v40 = vpack.c.bf16 %v2553_v29, %v2552_v39 }
 0xd35   :  { %4795 = vmatpush3.msra.mxu0 %v2553_v29 }
 0xd36   :  { %4796 = vmatprep.subr.mxu0 %v2552_v39 }
 0xd37   :  { %4797 = vmatpush3.msra.mxu0 %v2552_v39 }
 0xd38   :  { %4799 = vmatmul.mubr.msk.f32.vlgmr.msra.gmra.mxu0 %vm85_vm0, %v5719_v23  ;;  %2690 = vmatprep.subr.bf16.mxu0 %v5091_v26 }
 0xd39   :  { %4801 = vmatprep.mubr.msk.f32.mxu0 %vm85_vm0, %v5726_v59  ;;  %2691 = vmatpush1.bf16.msra.mxu0 %v5089_v4 }
 0xd3a   :  { %2692 = vmatprep.subr.bf16.mxu0 %v5094_v3 }
 0xd3c   :  { %4802 = vmatmul.mubr.msk.f32.gmra.mxu0 %vm85_vm0, %v5733_v25 }
 0xd3d   :  { %4804 = vmatprep.mubr.msk.f32.mxu0 %vm85_vm0, %v5740_v60  ;;  %2693 = vmatpush1.bf16.msra.mxu0 %v5092_v5 }
 0xd40   :  { %4805 = vmatmul.mubr.msk.f32.gmra.mxu0 %vm85_vm0, %v5747_v8 }
 0xd41   :  { %2710 = vmatprep.mubr.bf16.mxu0 %v5177_v24 }
 0xd44   :  { %4005 = vmatmul.mubr.msk.bf16.vlgmr.msra.gmra.mxu0 %vm223_vm1, %v6068_v40 }
 0xd45   :  { %4824 = vmatprep.mubr.msk.f32.mxu0 %vm85_vm0, %v5144_v33 }
 0xdf8   :  { %v6076_v34 = vpop.f32.mrf.mxu0 }
 0xdfa   :  { %v6078_v31 = vpop.f32.mrf.mxu0 }
 0xdfc   :  { %v6080_v35 = vpop.f32.mrf.mxu0 }
 0xdfe   :  { %v6082_v36 = vpop.f32.mrf.mxu0 }
 0xe00   :  { %v6084_v24 = vpop.f32.mrf.mxu0 }
 0xe02   :  { %v6086_v20 = vpop.f32.mrf.mxu0 }
 0xe04   :  { %v2712_v49 = vpop.f32.mrf.mxu0 }
 0xe06   :  { %v2714_v41 = vpop.f32.mrf.mxu0 }
 0xe08   :  { %v2716_v51 = vpop.f32.mrf.mxu0 }
 0xe09   :  { %4807 = vmatprep.subr.mxu1 %v2716_v51 }
 0xe0a   :  { %v2718_v53 = vpop.f32.mrf.mxu0  ;;  %4808 = vmatpush3.msra.mxu1 %v2716_v51 }
 0xe0b   :  { %4809 = vmatprep.subr.mxu1 %v2712_v49  ;;  %4820 = vmatprep.subr.mxu0 %v2718_v53 }
 0xe0c   :  { %4810 = vmatpush3.msra.mxu1 %v2712_v49  ;;  %4821 = vmatpush3.msra.mxu0 %v2718_v53 }
 0xe0d   :  { %4812 = vmatmul.mubr.msk.f32.vlgmr.msra.gmra.mxu1 %vm85_vm0, %v5719_v23  ;;  %4822 = vmatprep.subr.mxu0 %v2714_v41  ;;  %v5145_v23 = vld [vmem:[%s6377_s3 + $0x8] sm:$0xff] }
 0xe0e   :  { %4833 = vmatprep.subr.bf16.mxu1 %v5178_v38  ;;  %4823 = vmatpush3.msra.mxu0 %v2714_v41 }
 0xe0f   :  { %4834 = vmatpush3.bf16.msra.mxu1 %v5095_v48  ;;  %4814 = vmatprep.mubr.msk.f32.mxu1 %vm85_vm0, %v5726_v59  ;;  %v5097_v59 = vld [vmem:[%s6380_s6 + $0x48] sm:$0xff]  }
 0xe10   :  { %4835 = vmatprep.subr.bf16.mxu1 %v5178_v38  ;;  %4825 = vmatmul.mubr.msk.f32.vlgmr.msra.gmra.mxu0 %vm85_vm0, %v5145_v23 }
 0xe11   :  { %4815 = vmatmul.mubr.msk.f32.gmra.mxu1 %vm85_vm0, %v5733_v25  ;;  %4853 = vmatprep.subr.bf16.mxu0 %v5178_v38  ;;  %v5147_v25 = vld [vmem:[%s6377_s3 + $0x18] sm:$0xff] }
 0xe12   :  { %4817 = vmatprep.mubr.msk.f32.mxu1 %vm85_vm0, %v5740_v60  ;;  %4854 = vmatpush3.bf16.msra.mxu0 %v5099_v58  ;;  %v5148_v60 = vld [vmem:[%s6377_s3 + $0x20] sm:$0xff] }
 0xe13   :  { %4836 = vmatpush3.bf16.msra.mxu1 %v5096_v61  ;;  %4855 = vmatprep.subr.bf16.mxu0 %v5178_v38 }
 0xe14   :  { %4837 = vmatprep.subr.bf16.mxu1 %v5178_v38  ;;  %4827 = vmatprep.mubr.msk.f32.mxu0 %vm85_vm0, %v5146_v56 }
 0xe15   :  { %4818 = vmatmul.mubr.msk.f32.gmra.mxu1 %vm85_vm0, %v5747_v8  ;;  %4828 = vmatmul.mubr.msk.f32.gmra.mxu0 %vm85_vm0, %v5147_v25  ;;  %v5098_v8 = vld [vmem:[%s6380_s6 + $0x40] sm:$0xff]  }
 0xe16   :  { %4841 = vmatprep.mubr.msk.bf16.mxu1 %vm5179_vm2, %v5178_v38  ;;  %4830 = vmatprep.mubr.msk.f32.mxu0 %vm85_vm0, %v5148_v60 }
 0xe17   :  { %4838 = vmatpush3.bf16.msra.mxu1 %v5097_v59  ;;  %4856 = vmatpush3.bf16.msra.mxu0 %v5100_v47  ;;  %v5114_v47 = vld [vmem:[%s6383_s9 + $0x80] sm:$0xff]  }
 0xe18   :  { %4839 = vmatprep.subr.bf16.mxu1 %v5178_v38  ;;  %4857 = vmatprep.subr.bf16.mxu0 %v5178_v38 }
 0xe19   :  { %4831 = vmatmul.mubr.msk.f32.gmra.mxu0 %vm85_vm0, %v5149_v12 }
 0xe1a   :  { %4869 = vmatprep.mubr.msk.bf16.mxu0 %vm5179_vm2, %v5178_v38 }
 0xe1b   :  { %4840 = vmatpush3.bf16.msra.mxu1 %v5098_v8  ;;  %4858 = vmatpush3.bf16.msra.mxu0 %v5101_v19  ;;  %v5115_v19 = vld [vmem:[%s6384_s10 + $0xb8] sm:$0xff]  }
 0xe1c   :  { %4881 = vmatprep.subr.bf16.mxu1 %v5178_v38  ;;  %4859 = vmatprep.subr.bf16.mxu0 %v5178_v38 }
 0xe1e   :  { %4842 = vmatmul.mubr.msk.bf16.vlgmr.msra.gmra.mxu1 %vm529_vm3, %v5150_v9  ;;  %v5111_v9 = vld [vmem:[%s6383_s9 + $0x98] sm:$0xff]  }
 0xe1f   :  { %4845 = vmatprep.mubr.msk.bf16.mxu1 %vm5179_vm2, %v5178_v38  ;;  %4860 = vmatpush3.bf16.msra.mxu0 %v5102_v37  ;;  %v5116_v37 = vld [vmem:[%s6384_s10 + $0xb0] sm:$0xff]  }
 0xe20   :  { %4861 = vmatprep.subr.bf16.mxu0 %v5178_v38  ;;  %4882 = vmatpush3.bf16.msra.mxu1 %v5107_v30 }
 0xe21   :  { %4883 = vmatprep.subr.bf16.mxu1 %v5178_v38 }
 0xe23   :  { %4862 = vmatpush3.bf16.msra.mxu0 %v5103_v0  ;;  %v5117_v0 = vld [vmem:[%s6384_s10 + $0xa8] sm:$0xff]  }
 0xe24   :  { %4863 = vmatprep.subr.bf16.mxu0 %v5178_v38  ;;  %4884 = vmatpush3.bf16.msra.mxu1 %v5108_v28 }
 0xe25   :  { %4885 = vmatprep.subr.bf16.mxu1 %v5178_v38 }
 0xe26   :  { %4846 = vmatmul.mubr.msk.bf16.gmra.mxu1 %vm529_vm3, %v5151_v17  ;;  %v5112_v17 = vld [vmem:[%s6383_s9 + $0x90] sm:$0xff]  }
 0xe27   :  { %4849 = vmatprep.mubr.msk.bf16.mxu1 %vm5179_vm2, %v5178_v38  ;;  %4864 = vmatpush3.bf16.msra.mxu0 %v5104_v50  ;;  %v5118_v50 = vld [vmem:[%s6384_s10 + $0xa0] sm:$0xff]  }
 0xe28   :  { %4865 = vmatprep.subr.bf16.mxu0 %v5178_v38  ;;  %4886 = vmatpush3.bf16.msra.mxu1 %v5109_v63 }
 0xe29   :  { %4887 = vmatprep.subr.bf16.mxu1 %v5178_v38 }
 0xe2b   :  { %4866 = vmatpush3.bf16.msra.mxu0 %v5105_v43  ;;  %v5119_v43 = vld [vmem:[%s6384_s10 + $0x98] sm:$0xff]  }
 0xe2c   :  { %4867 = vmatprep.subr.bf16.mxu0 %v5178_v38  ;;  %4888 = vmatpush3.bf16.msra.mxu1 %v5110_v13 }
 0xe2d   :  { %4889 = vmatprep.subr.bf16.mxu1 %v5178_v38 }
 0xe2e   :  { %4850 = vmatmul.mubr.msk.bf16.gmra.mxu1 %vm529_vm3, %v5152_v18  ;;  %v5113_v18 = vld [vmem:[%s6383_s9 + $0x88] sm:$0xff]  }
 0xe2f   :  { %4897 = vmatprep.mubr.msk.bf16.mxu1 %vm5179_vm2, %v5178_v38  ;;  %4868 = vmatpush3.bf16.msra.mxu0 %v5106_v44 }
 0xe30   :  { %4909 = vmatprep.subr.bf16.mxu0 %v5178_v38  ;;  %4890 = vmatpush3.bf16.msra.mxu1 %v5111_v9 }
 0xe31   :  { %4891 = vmatprep.subr.bf16.mxu1 %v5178_v38 }
 0xe34   :  { %4892 = vmatpush3.bf16.msra.mxu1 %v5112_v17 }
 0xe35   :  { %4893 = vmatprep.subr.bf16.mxu1 %v5178_v38 }
 0xe38   :  { %4894 = vmatpush3.bf16.msra.mxu1 %v5113_v18 }
 0xe39   :  { %4895 = vmatprep.subr.bf16.mxu1 %v5178_v38 }
 0xe3c   :  { %4896 = vmatpush3.bf16.msra.mxu1 %v5114_v47 }
 0xecd   :  { %v6206_v10 = vpop.f32.mrf.mxu1 }
 0xecf   :  { %v6208_v7 = vpop.f32.mrf.mxu1 }
 0xed0   :  { %v4826_v44 = vpop.f32.mrf.mxu0 }
 0xed1   :  { %v6210_v45 = vpop.f32.mrf.mxu1 }
 0xed2   :  { %v2882_v30 = vpop.f32.mrf.mxu0 }
 0xed3   :  { %v6212_v52 = vpop.f32.mrf.mxu1 }
 0xed5   :  { %v6214_v55 = vpop.f32.mrf.mxu1  ;;  %v4829_v28 = vpop.f32.mrf.mxu0 }
 0xed7   :  { %v6216_v14 = vpop.f32.mrf.mxu1  ;;  %v2892_v63 = vpop.f32.mrf.mxu0 }
 0xed9   :  { %v4832_v13 = vpop.f32.mrf.mxu0 }
 0xede   :  { %v2982_v32 = vpop.f32.mrf.mxu1 }
 0xedf   :  { %v2983_v62 = vadd.f32 %v2982_v32, %v2923_v22 }
 0xee0   :  { %v4843_v57 = vpop.f32.mrf.mxu1 }
 0xee1   :  { %v3005_v39 = vmax.f32 %v2983_v62, 0.0 }
 0xee2   :  { %v2985_v2 = vpop.f32.mrf.mxu1 }
 0xee3   :  { %v2986_v27 = vadd.f32 %v2985_v2, %v2923_v22 }
 0xee4   :  { %v4844_v29 = vpop.f32.mrf.mxu1 }
 0xee5   :  { %v3006_v26 = vmax.f32 %v2986_v27, 0.0  ;;  %v3145_v27 = vrot.slane %v6031_v54, %v5538_v16 }
 0xee6   :  { %v2990_v4 = vpop.f32.mrf.mxu1 }
 0xee7   :  { %v3011_v3 = vpack.c.bf16 %v3006_v26, %v3005_v39  ;;  %v2991_v33 = vadd.f32 %v2990_v4, %v2923_v22 }
 0xee8   :  { %v4847_v5 = vpop.f32.mrf.mxu1 }
 0xee9   :  { %4870 = vmatmul.mubr.bf16.vlgmr.msra.gmra.mxu0 %v3011_v3  ;;  %v3007_v6 = vmax.f32 %v2991_v33, 0.0 }
 0xeea   :  { %v2993_v49 = vpop.f32.mrf.mxu1  ;;  %4873 = vmatprep.mubr.msk.bf16.mxu0 %vm5179_vm2, %v5178_v38  ;;  %4910 = vmatpush3.bf16.msra.mxu0 %v5115_v19 }
 0xeeb   :  { %v2994_v41 = vadd.f32 %v2993_v49, %v2923_v22  ;;  %4911 = vmatprep.subr.bf16.mxu0 %v5178_v38 }
 0xeec   :  { %v4848_v51 = vpop.f32.mrf.mxu1 }
 0xeed   :  { %v3008_v53 = vmax.f32 %v2994_v41, 0.0 }
 0xeee   :  { %v2998_v48 = vpop.f32.mrf.mxu1  ;;  %4912 = vmatpush3.bf16.msra.mxu0 %v5116_v37 }
 0xeef   :  { %v3012_v58 = vpack.c.bf16 %v3008_v53, %v3007_v6  ;;  %v2999_v23 = vadd.f32 %v2998_v48, %v2923_v22  ;;  %4913 = vmatprep.subr.bf16.mxu0 %v5178_v38 }
 0xef0   :  { %v4851_v61 = vpop.f32.mrf.mxu1 }
 0xef1   :  { %4874 = vmatmul.mubr.bf16.gmra.mxu0 %v3012_v58  ;;  %v3009_v60 = vmax.f32 %v2999_v23, 0.0 }
 0xef2   :  { %v3001_v59 = vpop.f32.mrf.mxu1  ;;  %4877 = vmatprep.mubr.msk.bf16.mxu0 %vm5179_vm2, %v5178_v38  ;;  %4914 = vmatpush3.bf16.msra.mxu0 %v5117_v0 }
 0xef3   :  { %v3002_v56 = vadd.f32 %v3001_v59, %v2923_v22  ;;  %4915 = vmatprep.subr.bf16.mxu0 %v5178_v38  ;;  %v2902_v22 = vpop.f32.mrf.mxu0 }
 0xef4   :  { %v4852_v25 = vpop.f32.mrf.mxu1 }
 0xef5   :  { %v3010_v8 = vmax.f32 %v3002_v56, 0.0 }
 0xef6   :  { %4916 = vmatpush3.bf16.msra.mxu0 %v5118_v50 }
 0xef7   :  { %v3013_v12 = vpack.c.bf16 %v3010_v8, %v3009_v60  ;;  %4917 = vmatprep.subr.bf16.mxu0 %v5178_v38 }
 0xef9   :  { %4878 = vmatmul.mubr.bf16.gmra.mxu0 %v3013_v12 }
 0xefa   :  { %4925 = vmatprep.mubr.msk.bf16.mxu0 %vm5179_vm2, %v5178_v38  ;;  %4918 = vmatpush3.bf16.msra.mxu0 %v5119_v43  ;;  %v5121_v43 = vld [vmem:[%s6384_s10 + $0x88] sm:$0xff]  }
 0xefb   :  { %4919 = vmatprep.subr.bf16.mxu0 %v5178_v38 }
 0xfa9   :  { %v3113_v32 = vpop.f32.mrf.mxu0 }
 0xfaa   :  { %v3114_v57 = vadd.f32 %v3113_v32, %v6208_v7 }
 0xfab   :  { %v4871_v62 = vpop.f32.mrf.mxu0 }
 0xfac   :  { %v3136_v2 = vadd.f32 %v3114_v57, %v2882_v30  ;;  %v3181_v30 = vrot.slane %v6031_v54, %v5565_v15 }
 0xfad   :  { %v3116_v29 = vpop.f32.mrf.mxu0 }
 0xfae   :  { %v3117_v39 = vadd.f32 %v6206_v10, %v3116_v29  ;;  %v3146_v4 = vadd.f32 %v3145_v27, %v3136_v2 }
 0xfaf   :  { %v4872_v26 = vpop.f32.mrf.mxu0 }
 0xfb0   :  { %v3137_v3 = vadd.f32 %v4826_v44, %v3117_v39  ;;  %v3152_v51 = vmax.f32 %v3146_v4, 0.0  ;;  %v5122_v44 = vld [vmem:[%s6384_s10 + $0x80] sm:$0xff]  }
 0xfb1   :  { %v3121_v5 = vpop.f32.mrf.mxu0 }
 0xfb2   :  { %v3147_v33 = vadd.f32 %v3145_v27, %v3137_v3  ;;  %v3122_v49 = vadd.f32 %v3121_v5, %v6212_v52 }
 0xfb3   :  { %v4875_v41 = vpop.f32.mrf.mxu0 }
 0xfb4   :  { %v3153_v6 = vmax.f32 %v3147_v33, 0.0  ;;  %v3138_v53 = vadd.f32 %v3122_v49, %v2892_v63 }
 0xfb5   :  { %v3124_v7 = vpop.f32.mrf.mxu0 }
 0xfb6   :  { %v3158_v48 = vpack.c.bf16 %v3153_v6, %v3152_v51  ;;  %v3125_v58 = vadd.f32 %v6210_v45, %v3124_v7  ;;  %v3148_v16 = vadd.f32 %v3145_v27, %v3138_v53 }
 0xfb7   :  { %v4876_v61 = vpop.f32.mrf.mxu0 }
 0xfb8   :  { %v3139_v23 = vadd.f32 %v4829_v28, %v3125_v58  ;;  %4898 = vmatmul.mubr.bf16.vlgmr.msra.gmra.mxu1 %v3158_v48  ;;  %v3154_v25 = vmax.f32 %v3148_v16, 0.0 }
 0xfb9   :  { %v3129_v10 = vpop.f32.mrf.mxu0  ;;  %4901 = vmatprep.mubr.msk.bf16.mxu1 %vm5179_vm2, %v5178_v38 }
 0xfba   :  { %v3149_v59 = vadd.f32 %v3145_v27, %v3139_v23  ;;  %v3130_v56 = vadd.f32 %v3129_v10, %v6216_v14  ;;  %v5153_v14 = vld [vmem:[%s6378_s4] sm:$0xff] }
 0xfbb   :  { %v4879_v52 = vpop.f32.mrf.mxu0 }
 0xfbc   :  { %v3155_v60 = vmax.f32 %v3149_v59, 0.0  ;;  %v3140_v8 = vadd.f32 %v3130_v56, %v2902_v22 }
 0xfbd   :  { %v3132_v12 = vpop.f32.mrf.mxu0 }
 0xfbe   :  { %v3133_v9 = vadd.f32 %v6214_v55, %v3132_v12  ;;  %v3159_v17 = vpack.c.bf16 %v3155_v60, %v3154_v25  ;;  %v3150_v18 = vadd.f32 %v3145_v27, %v3140_v8  ;;  %v5120_v55 = vld [vmem:[%s6384_s10 + $0x90] sm:$0xff]  }
 0xfbf   :  { %v4880_v45 = vpop.f32.mrf.mxu0  ;;  %4920 = vmatpush3.bf16.msra.mxu0 %v5120_v55 }
 0xfc0   :  { %v3141_v47 = vadd.f32 %v4832_v13, %v3133_v9  ;;  %4902 = vmatmul.mubr.bf16.gmra.mxu1 %v3159_v17  ;;  %v3156_v37 = vmax.f32 %v3150_v18, 0.0  ;;  %4921 = vmatprep.subr.bf16.mxu0 %v5178_v38  ;;  %v3316_v17 = vrot.slane %v6031_v54, %v5588_v1 }
 0xfc1   :  { %4905 = vmatprep.mubr.msk.bf16.mxu1 %vm5179_vm2, %v5178_v38 }
 0xfc2   :  { %v3151_v19 = vadd.f32 %v3145_v27, %v3141_v47 }
 0xfc3   :  { %4922 = vmatpush3.bf16.msra.mxu0 %v5121_v43 }
 0xfc4   :  { %v3157_v0 = vmax.f32 %v3151_v19, 0.0  ;;  %4923 = vmatprep.subr.bf16.mxu0 %v5178_v38 }
 0xfc6   :  { %v3160_v50 = vpack.c.bf16 %v3157_v0, %v3156_v37 }
 0xfc7   :  { %4924 = vmatpush3.bf16.msra.mxu0 %v5122_v44 }
 0xfc8   :  { %4906 = vmatmul.mubr.bf16.gmra.mxu1 %v3160_v50  ;;  %4968 = vmatprep.subr.bf16.mxu0 %v5178_v38 }
 0xfc9   :  { %4949 = vmatprep.mubr.msk.f32.mxu1 %vm1016_vm4, %v5153_v14 }
0x1078   :  { %v3264_v28 = vpop.f32.mrf.mxu1 }
0x1079   :  { %v3265_v13 = vadd.f32 %v3264_v28, %v3181_v30  ;;  %v5129_v28 = vld [vmem:[%s6387_s13 + $0xa8] sm:$0xff]  }
0x107a   :  { %v4899_v63 = vpop.f32.mrf.mxu1 }
0x107b   :  { %v3287_v62 = vmax.f32 %v3265_v13, 0.0 }
0x107c   :  { %v3267_v22 = vpop.f32.mrf.mxu1 }
0x107d   :  { %v3268_v32 = vadd.f32 %v3267_v22, %v3181_v30  ;;  %v5125_v22 = vld [vmem:[%s6385_s11 + $0x28] sm:$0xff]  }
0x107e   :  { %v4900_v57 = vpop.f32.mrf.mxu1 }
0x107f   :  { %v3288_v2 = vmax.f32 %v3268_v32, 0.0  ;;  %v5126_v57 = vld [vmem:[%s6385_s11 + $0x20] sm:$0xff]  }
0x1080   :  { %v3272_v27 = vpop.f32.mrf.mxu1 }
0x1081   :  { %v3293_v29 = vpack.c.bf16 %v3288_v2, %v3287_v62  ;;  %v3273_v26 = vadd.f32 %v3272_v27, %v3181_v30  ;;  %v5130_v62 = vld [vmem:[%s6387_s13 + $0xa0] sm:$0xff]   ;;  %v5131_v2 = vld [vmem:[%s6387_s13 + $0x98] sm:$0xff]   ;;  %v5132_v27 = vld [vmem:[%s6387_s13 + $0x90] sm:$0xff]  }
0x1082   :  { %v4903_v39 = vpop.f32.mrf.mxu1 }
0x1083   :  { %4926 = vmatmul.mubr.bf16.vlgmr.msra.gmra.mxu0 %v3293_v29  ;;  %v3289_v15 = vmax.f32 %v3273_v26, 0.0  ;;  %v5134_v29 = vld [vmem:[%s6387_s13 + $0x80] sm:$0xff]  }
0x1084   :  { %v3275_v4 = vpop.f32.mrf.mxu1  ;;  %4929 = vmatprep.mubr.msk.bf16.mxu0 %vm5179_vm2, %v5178_v38 }
0x1085   :  { %v3276_v3 = vadd.f32 %v3275_v4, %v3181_v30 }
0x1086   :  { %v4904_v5 = vpop.f32.mrf.mxu1 }
0x1087   :  { %v3290_v33 = vmax.f32 %v3276_v3, 0.0 }
0x1088   :  { %v3280_v49 = vpop.f32.mrf.mxu1 }
0x1089   :  { %v3294_v41 = vpack.c.bf16 %v3290_v33, %v3289_v15  ;;  %v3281_v6 = vadd.f32 %v3280_v49, %v3181_v30  ;;  %v3626_v33 = vrot.slane %v6031_v54, %v5667_v11 }
0x108a   :  { %v4907_v51 = vpop.f32.mrf.mxu1 }
0x108b   :  { %4930 = vmatmul.mubr.bf16.gmra.mxu0 %v3294_v41  ;;  %v3291_v58 = vmax.f32 %v3281_v6, 0.0 }
0x108c   :  { %v3283_v53 = vpop.f32.mrf.mxu1  ;;  %4933 = vmatprep.mubr.msk.bf16.mxu0 %vm5179_vm2, %v5178_v38 }
0x108d   :  { %v3284_v7 = vadd.f32 %v3283_v53, %v3181_v30 }
0x108e   :  { %v4908_v48 = vpop.f32.mrf.mxu1 }
0x108f   :  { %v3292_v61 = vmax.f32 %v3284_v7, 0.0 }
0x1091   :  { %v3295_v16 = vpack.c.bf16 %v3292_v61, %v3291_v58  ;;  %v3652_v61 = vrot.slane %v6031_v54, %v5685_v42 }
0x1093   :  { %4934 = vmatmul.mubr.bf16.gmra.mxu0 %v3295_v16 }
0x1094   :  { %4984 = vmatprep.mubr.msk.bf16.mxu0 %vm5179_vm2, %v5178_v38 }
0x1143   :  { %v3399_v23 = vpop.f32.mrf.mxu0 }
0x1144   :  { %v3400_v44 = vadd.f32 %v3399_v23, %v3316_v17 }
0x1145   :  { %v4927_v10 = vpop.f32.mrf.mxu0 }
0x1147   :  { %v3402_v59 = vpop.f32.mrf.mxu0 }
0x1148   :  { %v3403_v55 = vadd.f32 %v3402_v59, %v3316_v17 }
0x1149   :  { %v4928_v56 = vpop.f32.mrf.mxu0 }
0x114a   :  { %v3423_v30 = vmul.f32 %v6076_v34, %v3403_v55  ;;  %v5124_v34 = vld [vmem:[%s6386_s12 + $0x20] sm:$0xff]  }
0x114b   :  { %v3407_v52 = vpop.f32.mrf.mxu0 }
0x114c   :  { %v3408_v50 = vadd.f32 %v3407_v52, %v3316_v17 }
0x114d   :  { %v4931_v25 = vpop.f32.mrf.mxu0 }
0x114e   :  { %v3424_v1 = vmul.f32 %v3408_v50, %v6082_v36  ;;  %v5128_v36 = vld [vmem:[%s6387_s13 + $0xb0] sm:$0xff]  }
0x114f   :  { %v3410_v60 = vpop.f32.mrf.mxu0 }
0x1150   :  { %v3411_v37 = vadd.f32 %v3410_v60, %v3316_v17 }
0x1151   :  { %v4932_v8 = vpop.f32.mrf.mxu0 }
0x1152   :  { %v3425_v43 = vmul.f32 %v6080_v35, %v3411_v37  ;;  %v5154_v35 = vld [vmem:[%s6378_s4 + $0x8] sm:$0xff] }
0x1153   :  { %v3415_v12 = vpop.f32.mrf.mxu0 }
0x1154   :  { %v3416_v18 = vadd.f32 %v3415_v12, %v3316_v17 }
0x1155   :  { %v4935_v9 = vpop.f32.mrf.mxu0 }
0x1156   :  { %v3426_v14 = vmul.f32 %v3416_v18, %v6086_v20  ;;  %v5123_v20 = vld [vmem:[%s6386_s12 + $0x28] sm:$0xff]  }
0x1157   :  { %v3418_v45 = vpop.f32.mrf.mxu0 }
0x1158   :  { %v3419_v47 = vadd.f32 %v3418_v45, %v3316_v17 }
0x1159   :  { %v4936_v19 = vpop.f32.mrf.mxu0 }
0x115a   :  { %v3427_v0 = vmul.f32 %v6084_v24, %v3419_v47  ;;  %v3422_v24 = vmul.f32 %v3400_v44, %v6078_v31  ;;  %v5127_v31 = vld [vmem:[%s6387_s13 + $0xb8] sm:$0xff]  }
0x115b   :  { %4969 = vmatpush3.bf16.msra.mxu0 %v5127_v31 }
0x115c   :  { %4937 = vmatprep.subr.mxu1 %v3427_v0  ;;  %4970 = vmatprep.subr.bf16.mxu0 %v5178_v38 }
0x115d   :  { %4938 = vmatpush3.msra.mxu1 %v3427_v0 }
0x115e   :  { %4939 = vmatprep.subr.mxu1 %v3426_v14 }
0x115f   :  { %4940 = vmatpush3.msra.mxu1 %v3426_v14  ;;  %4971 = vmatpush3.bf16.msra.mxu0 %v5128_v36 }
0x1160   :  { %4941 = vmatprep.subr.mxu1 %v3425_v43  ;;  %4972 = vmatprep.subr.bf16.mxu0 %v5178_v38 }
0x1161   :  { %4942 = vmatpush3.msra.mxu1 %v3425_v43 }
0x1162   :  { %4943 = vmatprep.subr.mxu1 %v3424_v1 }
0x1163   :  { %4944 = vmatpush3.msra.mxu1 %v3424_v1  ;;  %4973 = vmatpush3.bf16.msra.mxu0 %v5129_v28 }
0x1164   :  { %4945 = vmatprep.subr.mxu1 %v3423_v30  ;;  %4974 = vmatprep.subr.bf16.mxu0 %v5178_v38 }
0x1165   :  { %4946 = vmatpush3.msra.mxu1 %v3423_v30 }
0x1166   :  { %4947 = vmatprep.subr.mxu1 %v3422_v24 }
0x1167   :  { %4948 = vmatpush3.msra.mxu1 %v3422_v24  ;;  %4975 = vmatpush3.bf16.msra.mxu0 %v5130_v62 }
0x1168   :  { %4950 = vmatmul.mubr.msk.f32.vlgmr.msra.gmra.mxu1 %vm1016_vm4, %v5154_v35  ;;  %4952 = vmatprep.subr.bf16.mxu1 %v5178_v38 }
0x1169   :  { %4953 = vmatpush3.bf16.msra.mxu1 %v5123_v20  ;;  %4956 = vmatprep.mubr.msk.bf16.mxu1 %vm5179_vm2, %v5178_v38 }
0x116a   :  { %4954 = vmatprep.subr.bf16.mxu1 %v5178_v38  ;;  %4976 = vmatprep.subr.bf16.mxu0 %v5178_v38 }
0x116b   :  { %4977 = vmatpush3.bf16.msra.mxu0 %v5131_v2 }
0x116c   :  { %4978 = vmatprep.subr.bf16.mxu0 %v5178_v38 }
0x116d   :  { %4955 = vmatpush3.bf16.msra.mxu1 %v5124_v34 }
0x116e   :  { %4960 = vmatprep.subr.bf16.mxu1 %v5178_v38 }
0x116f   :  { %4979 = vmatpush3.bf16.msra.mxu0 %v5132_v27 }
0x1170   :  { %4980 = vmatprep.subr.bf16.mxu0 %v5178_v38 }
0x1228   :  { %v4951_v63 = vpop.f32.mrf.mxu1 }
0x122a   :  { %v3494_v13 = vpop.f32.mrf.mxu1 }
0x122b   :  { %v3508_v32 = vpack.c.bf16 %v4951_v63, %v3494_v13 }
0x122d   :  { %4957 = vmatmul.mubr.msk.bf16.vlgmr.msra.gmra.mxu1 %vm223_vm1, %v3508_v32 }
0x122e   :  { %4961 = vmatpush3.bf16.msra.mxu1 %v5125_v22  ;;  %4964 = vmatprep.mubr.msk.bf16.mxu1 %vm5179_vm2, %v5178_v38 }
0x122f   :  { %4962 = vmatprep.subr.bf16.mxu1 %v5178_v38 }
0x1232   :  { %4963 = vmatpush3.bf16.msra.mxu1 %v5126_v57 }
0x1235   :  { %4965 = vmatmul.mubr.msk.bf16.vlgmr.msra.gmra.mxu1 %vm223_vm1, %v6068_v40  ;;  %v5133_v40 = vld [vmem:[%s6387_s13 + $0x88] sm:$0xff]   ;;  %s5180_s13 = smov [#allocation2]  }
0x1236   :  { %4981 = vmatpush3.bf16.msra.mxu0 %v5133_v40  ;;  %s3751_s7 = sshll.u32 %s5180_s13, 4  ;;  %s3752_s7 = int_to_ptr.vmem [resolvable:$true] %s3751_s7 }
0x1237   :  { %4982 = vmatprep.subr.bf16.mxu0 %v5178_v38  ;;  %s5155_s2 = scalar_lea.vmem %s3752_s7, 256  ;;  %p5160_p1 = scmp.lt.s32.totalorder %s3752_s7, %s3752_s7 }
0x1238   :  { %p5156_p0 = scmp.ne.s32.totalorder %s3752_s7, %s5155_s2  ;;  %p5161_p2 = scmp.lt.s32.totalorder %s5155_s2, %s5155_s2 }
0x123a   :  { %4983 = vmatpush3.bf16.msra.mxu0 %v5134_v29  ;;  %p5162_p3 = por %p5161_p2, %p5160_p1 }
0x123c   :  { %p5163_p4 = pnand %p5162_p3, %p5156_p0 }
0x12ed   :  { %v3563_v39 = vpop.f32.mrf.mxu1 }
0x12ef   :  { %v4958_v26 = vpop.f32.mrf.mxu1 }
0x12f1   :  { %v3566_v4 = vpop.f32.mrf.mxu1 }
0x12f3   :  { %v4959_v3 = vpop.f32.mrf.mxu1 }
0x12f5   :  { %v3616_v5 = vpop.f32.mrf.mxu1 }
0x12f6   :  { %v3617_v15 = vadd.f32 %v3616_v5, %v3563_v39 }
0x12f7   :  { %v4966_v49 = vpop.f32.mrf.mxu1 }
0x12f8   :  { %v3627_v51 = vadd.f32 %v3626_v33, %v3617_v15 }
0x12f9   :  { %v3619_v41 = vpop.f32.mrf.mxu1 }
0x12fa   :  { %v3620_v6 = vadd.f32 %v3619_v41, %v3566_v4  ;;  %v3629_v7 = vmax.f32 %v3627_v51, 0.0 }
0x12fb   :  { %v4967_v53 = vpop.f32.mrf.mxu1 }
0x12fc   :  { %v3628_v38 = vadd.f32 %v3626_v33, %v3620_v6 }
0x12fe   :  { %v3630_v48 = vmax.f32 %v3628_v38, 0.0 }
0x1300   :  { %v3631_v58 = vpack.c.bf16 %v3630_v48, %v3629_v7 }
0x1302   :  { %4985 = vmatmul.mubr.bf16.vlgmr.msra.gmra.mxu0 %v3631_v58 }
0x13c2   :  { %v3735_v16 = vpop.f32.mrf.mxu0 }
0x13c3   :  { %v3736_v23 = vadd.f32 %v3735_v16, %v3652_v61 }
0x13c4   :  { %v4986_v10 = vpop.f32.mrf.mxu0 }
0x13c5   :  { %v3742_v59 = vadd.f32 %v3736_v23, %v6034_v21 }
0x13c6   :  { %v3738_v11 = vpop.f32.mrf.mxu0 }
0x13c7   :  { %3744 = vst.msk [vmem:[#allocation2] sm:$0xff] %vm223_vm1, %v3742_v59  ;;  %v3739_v56 = vadd.f32 %v3738_v11, %v3652_v61 }
0x13c8   :  { %v4987_v52 = vpop.f32.mrf.mxu0 }
0x13c9   :  { %v3743_v25 = vadd.f32 %v3739_v56, %v6039_v46 }
0x13cb   :  { %3745 = vst.msk [vmem:[#allocation2 + $0x8] sm:$0xff] %vm223_vm1, %v3743_v25 }
0x13cc   :  { %5166 = shalt.err (!%p5163_p4)
}
0x13cd   :  { %s5181_s3 = smov 128   ;;  %s5182_s10 = smov 8  }
0x13ce   :  { %3757 = dma.vmem_to_hbm [thread:$0]  %s3752_s7, 256, %s6388_s14, [#allocation3], %s5181_s3, %s5181_s3, %s5182_s10  }
0x13cf   :  { %5175 = dma.done.wait [#allocation3], 256  }
0x13d0   :  { %5176 = vsyncadd [#allocation3], 4294967040 }
0x13d1   :  { %3761 = vsyncpa [#allocation3], 1 }

</bundles_post_ra>
